<compile_context>
chip_gen: v5e
topology: v5e:2x2
jax: 0.10.0
libtpu: 0.0.40
codegen_flags: <defaults>
</compile_context>

<pallas_src>
import functools
import math

import jax
import jax.numpy as jnp
from jax.experimental import pallas as pl
from jax.experimental.pallas import tpu as pltpu

_F32 = jnp.float32
_BF16 = jnp.bfloat16


def _vmem_budget_and_max_tile():
    """Generation-aware scoped-VMEM limit and max query-tile length."""
    try:
        cap = int(pltpu.get_tpu_info().vmem_capacity_bytes)
    except Exception:
        # Unknown generation: stay conservative (safe on 64 MiB/TC chips too).
        return 48 * 1024 * 1024, 128
    limit = min(cap - 12 * 1024 * 1024, 100 * 1024 * 1024)
    max_tile = 128 if cap <= 64 * 1024 * 1024 else 256
    return limit, max_tile


def _layernorm_f32(y, gamma, beta, eps=1e-5):
    mean = jnp.mean(y, axis=-1, keepdims=True)
    var = jnp.mean(jnp.square(y - mean), axis=-1, keepdims=True)
    return (y - mean) * jax.lax.rsqrt(var + eps) * gamma + beta


def _split_heads(x, num_heads, proj_dim):
    # (T, E) -> (H, T, pd) via static lane slices (known-good Mosaic lowering path).
    # TODO(synk): when proj_dim % 128 == 0, switch to a reshape + pltpu.einshape head split to
    # avoid the per-slice lane relayouts at non-128-aligned head widths.
    return jnp.stack(
        [x[:, h * proj_dim:(h + 1) * proj_dim] for h in range(num_heads)], axis=0)


def _attention_ffn(xq_f32, q, kh, vh,
                   wo_ref, bo_ref, g1_ref, be1_ref,
                   w1_ref, b1_ref, w2_ref, b2_ref, g2_ref, be2_ref,
                   *, num_heads, proj_dim, valid_len, kv_len):
    """Attention (scale already folded into Q) + residual/LN1 + FFN + residual/LN2."""
    qh = _split_heads(q, num_heads, proj_dim).astype(_BF16)                    # (H, tq, pd)

    # TODO(synk): for very long sequences, stream KV tiles flash-style (online softmax) so the
    # live score block is (H, tq, tk) instead of (H, tq, S_pad).
    scores = jnp.einsum('hqd,hkd->hqk', qh, kh, preferred_element_type=_F32)   # (H, tq, S_pad)
    if valid_len < kv_len:
        key_idx = jax.lax.broadcasted_iota(jnp.int32, (1, 1, kv_len), 2)
        scores = jnp.where(key_idx < valid_len, scores, -1e30)                 # mask padded keys
    scores = scores - jnp.max(scores, axis=-1, keepdims=True)

    # exp in bf16 (EUP bf16 path on v6e/v7x); denominator accumulated in f32.
    p = jnp.exp(scores.astype(_BF16))
    denom = jnp.sum(p.astype(_F32), axis=-1, keepdims=True)
    inv = pl.reciprocal(denom, approx=True)
    p = p * inv.astype(_BF16)                                                  # (H, tq, S_pad) bf16

    ctx = jnp.einsum('hqk,hkd->hqd', p, vh, preferred_element_type=_F32)       # (H, tq, pd) f32

    # Fused output projection: heads back to (tq, E), one (tq, E) x (E, E) matmul with Wo.
    ctx2 = jnp.concatenate([ctx[h] for h in range(num_heads)], axis=-1).astype(_BF16)
    attn = jnp.dot(ctx2, wo_ref[...], preferred_element_type=_F32) + bo_ref[...]

    # residual + LayerNorm1 (dropout == identity in eval mode); f32 elementwise math.
    y1 = _layernorm_f32(xq_f32 + attn, g1_ref[...], be1_ref[...])

    # FFN: Linear -> ReLU -> Linear.
    h1 = jnp.dot(y1.astype(_BF16), w1_ref[...], preferred_element_type=_F32) + b1_ref[...]
    h1 = jnp.maximum(h1, 0.0)
    ffn = jnp.dot(h1.astype(_BF16), w2_ref[...], preferred_element_type=_F32) + b2_ref[...]

    # residual + LayerNorm2.
    return _layernorm_f32(y1 + ffn, g2_ref[...], be2_ref[...])


def _block_kernel_single_tile(
        xq_ref,
        wqkv_ref, bqkv_ref, wo_ref, bo_ref, g1_ref, be1_ref,
        w1_ref, b1_ref, w2_ref, b2_ref, g2_ref, be2_ref,
        out_ref, *, num_heads):
    """Whole sequence fits in one query tile: one fused wide QKV matmul, no scratch."""
    xq_bf = xq_ref[0]                                  # (S, E) bf16
    S, E = xq_bf.shape
    pd = E // num_heads

    qkv = jnp.dot(xq_bf, wqkv_ref[...], preferred_element_type=_F32) + bqkv_ref[...]
    q = qkv[:, :E]                                     # scale folded into the Q slice
    kh = _split_heads(qkv[:, E:2 * E], num_heads, pd).astype(_BF16)
    vh = _split_heads(qkv[:, 2 * E:], num_heads, pd).astype(_BF16)

    out = _attention_ffn(xq_bf.astype(_F32), q, kh, vh,
                         wo_ref, bo_ref, g1_ref, be1_ref,
                         w1_ref, b1_ref, w2_ref, b2_ref, g2_ref, be2_ref,
                         num_heads=num_heads, proj_dim=pd, valid_len=S, kv_len=S)
    out_ref[0] = out.astype(out_ref.dtype)


def _block_kernel_tiled(
        xq_ref, xkv_ref,
        wqkv_ref, bqkv_ref, wo_ref, bo_ref, g1_ref, be1_ref,
        w1_ref, b1_ref, w2_ref, b2_ref, g2_ref, be2_ref,
        out_ref, k_sc, v_sc, *, num_heads, valid_len):
    """Query-tiled path: K/V projected once per batch element and persisted in VMEM scratch."""
    xq_bf = xq_ref[0]                                  # (tq, E) bf16
    tq, E = xq_bf.shape
    pd = E // num_heads

    wqkv = wqkv_ref[...]                               # (E, 3E) bf16, scale folded into Q cols
    bqkv = bqkv_ref[...]                               # (1, 3E) f32

    @pl.when(pl.program_id(1) == 0)
    def _():
        # Compute K|V for the full (padded) sequence once per batch element; persist head-
        # stacked in bf16 scratch so later query tiles reuse them (qi axis is "arbitrary").
        xkv_bf = xkv_ref[0]                            # (S_pad, E) bf16
        kv = jnp.dot(xkv_bf, wqkv[:, E:], preferred_element_type=_F32) + bqkv[:, E:]
        k_sc[...] = _split_heads(kv[:, :E], num_heads, pd).astype(_BF16)
        v_sc[...] = _split_heads(kv[:, E:], num_heads, pd).astype(_BF16)

    q = jnp.dot(xq_bf, wqkv[:, :E], preferred_element_type=_F32) + bqkv[:, :E]

    out = _attention_ffn(xq_bf.astype(_F32), q, k_sc[...], v_sc[...],
                         wo_ref, bo_ref, g1_ref, be1_ref,
                         w1_ref, b1_ref, w2_ref, b2_ref, g2_ref, be2_ref,
                         num_heads=num_heads, proj_dim=pd,
                         valid_len=valid_len, kv_len=k_sc.shape[1])
    out_ref[0] = out.astype(out_ref.dtype)


def _weight_spec(shape, single_buffer):
    idx = lambda b, qi: (0,) * len(shape)
    if single_buffer:
        # Constant-index resident blocks: single buffer (halves their VMEM footprint).
        return pl.BlockSpec(shape, idx, pipeline_mode=pl.Buffered(1))
    return pl.BlockSpec(shape, idx)


def transformer_block(x, params, num_heads, *, max_tile=None):
    B, S, E = x.shape
    F = params["w1"].shape[1]
    assert E % num_heads == 0
    pd = E // num_heads
    scale = 1.0 / math.sqrt(pd)

    vmem_limit, default_max_tile = _vmem_budget_and_max_tile()
    if max_tile is None:
        max_tile = default_max_tile

    # Fused QKV weight; fold the 1/sqrt(pd) softmax scale into the Q slice (zero kernel cost).
    wqkv = jnp.concatenate(
        [params["wq"] * scale, params["wk"], params["wv"]], axis=1).astype(_BF16)
    bqkv = jnp.concatenate(
        [params["bq"] * scale, params["bk"], params["bv"]], axis=1).astype(_F32)
    wo = params["wo"].astype(_BF16)
    w1 = params["w1"].astype(_BF16)
    w2 = params["w2"].astype(_BF16)

    if S <= max_tile:
        tq, nq, s_pad = S, 1, S
    else:
        tq = max_tile
        nq = pl.cdiv(S, tq)
        s_pad = nq * tq

    x_bf = x.astype(_BF16)
    if s_pad != S:
        x_bf = jnp.pad(x_bf, ((0, 0), (0, s_pad - S), (0, 0)))

    weight_args = (
        wqkv, bqkv, wo, params["bo"].astype(_F32),
        params["g1"].astype(_F32), params["be1"].astype(_F32),
        w1, params["b1"].astype(_F32), w2, params["b2"].astype(_F32),
        params["g2"].astype(_F32), params["be2"].astype(_F32),
    )
    weight_shapes = [(E, 3 * E), (1, 3 * E), (E, E), (1, E), (1, E), (1, E),
                     (E, F), (1, F), (F, E), (1, E), (1, E), (1, E)]

    def run(single_buffer_weights):
        w_specs = [_weight_spec(s, single_buffer_weights) for s in weight_shapes]
        out_spec = pl.BlockSpec((1, tq, E), lambda b, qi: (b, qi, 0))

        if nq == 1:
            kernel = functools.partial(_block_kernel_single_tile, num_heads=num_heads)
            in_specs = [pl.BlockSpec((1, tq, E), lambda b, qi: (b, qi, 0))] + w_specs
            args = (x_bf,) + weight_args
            scratch = []
            dims = ("parallel", "parallel")
        else:
            kernel = functools.partial(_block_kernel_tiled, num_heads=num_heads, valid_len=S)
            in_specs = [pl.BlockSpec((1, tq, E), lambda b, qi: (b, qi, 0)),
                        pl.BlockSpec((1, s_pad, E), lambda b, qi: (b, 0, 0))] + w_specs
            args = (x_bf, x_bf) + weight_args
            scratch = [pltpu.VMEM((num_heads, s_pad, pd), _BF16),   # K (head-stacked)
                       pltpu.VMEM((num_heads, s_pad, pd), _BF16)]   # V (head-stacked)
            # qi must run sequentially within a batch element so the K/V scratch written at
            # qi == 0 is visible to later query tiles; batch stays "parallel" for megacore.
            # TODO(synk): for B == 1 on 2-TensorCore chips, shard qi across cores (with
            # per-core K/V recompute) instead of marking it "arbitrary".
            dims = ("parallel", "arbitrary")

        out = pl.pallas_call(
            kernel,
            out_shape=jax.ShapeDtypeStruct((B, s_pad, E), _F32),
            grid_spec=pltpu.PrefetchScalarGridSpec(
                num_scalar_prefetch=0,
                grid=(B, nq),
                in_specs=in_specs,
                out_specs=out_spec,
                scratch_shapes=scratch),
            compiler_params=pltpu.CompilerParams(
                dimension_semantics=dims,
                vmem_limit_bytes=vmem_limit),
        )(*args)
        return out

    try:
        out = jax.block_until_ready(run(True))
    except Exception:
        # Fallback for JAX builds where pipeline_mode=pl.Buffered(1) is not supported on the
        # implicit pallas_call pipeline: default (double-buffered) weight blocks.
        out = jax.block_until_ready(run(False))

    if s_pad != S:
        out = out[:, :S, :]
    return out


def _reference(x, params, num_heads):
    """Pure-JAX f32 reference of the PyTorch TransformerBlock (eval mode)."""
    B, S, E = x.shape
    pd = E // num_heads

    def lin(v, w, b):
        return v @ w + b

    def split(t):
        return t.reshape(B, S, num_heads, pd).transpose(0, 2, 1, 3)

    q, k, v = (lin(x, params["wq"], params["bq"]),
               lin(x, params["wk"], params["bk"]),
               lin(x, params["wv"], params["bv"]))
    qh, kh, vh = split(q), split(k), split(v)
    scores = qh @ kh.transpose(0, 1, 3, 2) / math.sqrt(pd)
    w = jax.nn.softmax(scores, axis=-1)
    ctx = (w @ vh).transpose(0, 2, 1, 3).reshape(B, S, E)
    att = lin(ctx, params["wo"], params["bo"])

    def ln(t, g, b):
        m = t.mean(-1, keepdims=True)
        var = ((t - m) ** 2).mean(-1, keepdims=True)
        return (t - m) / jnp.sqrt(var + 1e-5) * g + b

    y1 = ln(x + att, params["g1"], params["be1"])
    ffn = lin(jnp.maximum(lin(y1, params["w1"], params["b1"]), 0.0),
              params["w2"], params["b2"])
    return ln(y1 + ffn, params["g2"], params["be2"])


def init_params(key, embed_dim, ff_dim):
    ks = jax.random.split(key, 12)
    s = 0.02
    return {
        "wq": jax.random.normal(ks[0], (embed_dim, embed_dim), jnp.float32) * s,
        "bq": jax.random.normal(ks[1], (1, embed_dim), jnp.float32) * s,
        "wk": jax.random.normal(ks[2], (embed_dim, embed_dim), jnp.float32) * s,
        "bk": jax.random.normal(ks[3], (1, embed_dim), jnp.float32) * s,
        "wv": jax.random.normal(ks[4], (embed_dim, embed_dim), jnp.float32) * s,
        "bv": jax.random.normal(ks[5], (1, embed_dim), jnp.float32) * s,
        "wo": jax.random.normal(ks[6], (embed_dim, embed_dim), jnp.float32) * s,
        "bo": jax.random.normal(ks[7], (1, embed_dim), jnp.float32) * s,
        "g1": jnp.ones((1, embed_dim), jnp.float32),
        "be1": jnp.zeros((1, embed_dim), jnp.float32),
        "w1": jax.random.normal(ks[8], (embed_dim, ff_dim), jnp.float32) * s,
        "b1": jax.random.normal(ks[9], (1, ff_dim), jnp.float32) * s,
        "w2": jax.random.normal(ks[10], (ff_dim, embed_dim), jnp.float32) * s,
        "b2": jax.random.normal(ks[11], (1, embed_dim), jnp.float32) * s,
        "g2": jnp.ones((1, embed_dim), jnp.float32),
        "be2": jnp.zeros((1, embed_dim), jnp.float32),
    }


if __name__ == "__main__":
    E, H, FF = 32, 4, 64
    key = jax.random.PRNGKey(0)
    kx1, kx2, kp = jax.random.split(key, 3)
    params = init_params(kp, E, FF)

    # Case 1: whole sequence in one query tile (single-input kernel, no scratch).
    x1 = jax.random.normal(kx1, (2, 8, E), jnp.float32)
    # Case 2: multi query-tile path with a ragged tail (padding + key masking + persisted K/V).
    x2 = jax.random.normal(kx2, (2, 40, E), jnp.float32)

    for x, kwargs in ((x1, {}), (x2, {"max_tile": 16})):
        out = jax.block_until_ready(transformer_block(x, params, num_heads=H, **kwargs))
        ref = _reference(x, params, H)
        assert out.shape == ref.shape
        assert bool(jnp.all(jnp.isfinite(out)))
        err = float(jnp.max(jnp.abs(out - ref)))
        assert err < 0.15, f"max abs error too large: {err}"

    print("KERNEL_OK")
</pallas_src>

<mosaic_0001>
module attributes {stable_mosaic.version = 11 : i64} {
  func.func @_block_kernel_single_tile(%arg0: i32, %arg1: i32, %arg2: memref<1x8x32xbf16, #tpu.memory_space<vmem>>, %arg3: memref<32x96xbf16, #tpu.memory_space<vmem>>, %arg4: memref<1x96xf32, #tpu.memory_space<vmem>>, %arg5: memref<32x32xbf16, #tpu.memory_space<vmem>>, %arg6: memref<1x32xf32, #tpu.memory_space<vmem>>, %arg7: memref<1x32xf32, #tpu.memory_space<vmem>>, %arg8: memref<1x32xf32, #tpu.memory_space<vmem>>, %arg9: memref<32x64xbf16, #tpu.memory_space<vmem>>, %arg10: memref<1x64xf32, #tpu.memory_space<vmem>>, %arg11: memref<64x32xbf16, #tpu.memory_space<vmem>>, %arg12: memref<1x32xf32, #tpu.memory_space<vmem>>, %arg13: memref<1x32xf32, #tpu.memory_space<vmem>>, %arg14: memref<1x32xf32, #tpu.memory_space<vmem>>, %arg15: memref<1x8x32xf32, #tpu.memory_space<vmem>>) attributes {dimension_semantics = [#tpu.dimension_semantics<parallel>, #tpu.dimension_semantics<parallel>], iteration_bounds = array<i64: 2, 1>, scalar_prefetch = 0 : i64, scratch_operands = 0 : i64, tpu.core_type = #tpu.core_type<tc>, window_params = [{transform_indices = @transform_0, window_bounds = array<i64: 1, 8, 32>}, {pipeline_mode = #tpu.pipeline_mode<synchronous>, transform_indices = @transform_1, window_bounds = array<i64: 32, 96>}, {pipeline_mode = #tpu.pipeline_mode<synchronous>, transform_indices = @transform_2, window_bounds = array<i64: 1, 96>}, {pipeline_mode = #tpu.pipeline_mode<synchronous>, transform_indices = @transform_3, window_bounds = array<i64: 32, 32>}, {pipeline_mode = #tpu.pipeline_mode<synchronous>, transform_indices = @transform_4, window_bounds = array<i64: 1, 32>}, {pipeline_mode = #tpu.pipeline_mode<synchronous>, transform_indices = @transform_5, window_bounds = array<i64: 1, 32>}, {pipeline_mode = #tpu.pipeline_mode<synchronous>, transform_indices = @transform_6, window_bounds = array<i64: 1, 32>}, {pipeline_mode = #tpu.pipeline_mode<synchronous>, transform_indices = @transform_7, window_bounds = array<i64: 32, 64>}, {pipeline_mode = #tpu.pipeline_mode<synchronous>, transform_indices = @transform_8, window_bounds = array<i64: 1, 64>}, {pipeline_mode = #tpu.pipeline_mode<synchronous>, transform_indices = @transform_9, window_bounds = array<i64: 64, 32>}, {pipeline_mode = #tpu.pipeline_mode<synchronous>, transform_indices = @transform_10, window_bounds = array<i64: 1, 32>}, {pipeline_mode = #tpu.pipeline_mode<synchronous>, transform_indices = @transform_11, window_bounds = array<i64: 1, 32>}, {pipeline_mode = #tpu.pipeline_mode<synchronous>, transform_indices = @transform_12, window_bounds = array<i64: 1, 32>}, {transform_indices = @transform_13, window_bounds = array<i64: 1, 8, 32>}]} {
    %c0 = arith.constant 0 : index
    %c0_0 = arith.constant 0 : index
    %c0_1 = arith.constant 0 : index
    %0 = vector.load %arg2[%c0, %c0_0, %c0_1] : memref<1x8x32xbf16, #tpu.memory_space<vmem>>, vector<1x8x32xbf16>
    %1 = vector.shape_cast %0 : vector<1x8x32xbf16> to vector<8x32xbf16>
    %c0_2 = arith.constant 0 : index
    %c0_3 = arith.constant 0 : index
    %2 = vector.load %arg3[%c0_2, %c0_3] : memref<32x96xbf16, #tpu.memory_space<vmem>>, vector<32x96xbf16>
    %cst = arith.constant dense<0.000000e+00> : vector<8x96xf32>
    %3 = tpu.matmul %1, %2, %cst {dimension_numbers = #tpu.dot_dimension_numbers<[1], [0], [0], [1], [0, 0, 1, 1], [], []>} : vector<8x32xbf16>, vector<32x96xbf16>, vector<8x96xf32> -> vector<8x96xf32>
    %c0_4 = arith.constant 0 : index
    %c0_5 = arith.constant 0 : index
    %4 = vector.load %arg4[%c0_4, %c0_5] : memref<1x96xf32, #tpu.memory_space<vmem>>, vector<1x96xf32>
    %5 = vector.broadcast %4 : vector<1x96xf32> to vector<8x96xf32>
    %6 = arith.addf %3, %5 : vector<8x96xf32>
    %7 = vector.extract_strided_slice %6 {offsets = [0, 0], sizes = [8, 32], strides = [1, 1]} : vector<8x96xf32> to vector<8x32xf32>
    %8 = vector.extract_strided_slice %6 {offsets = [0, 32], sizes = [8, 32], strides = [1, 1]} : vector<8x96xf32> to vector<8x32xf32>
    %9 = vector.extract_strided_slice %8 {offsets = [0, 0], sizes = [8, 8], strides = [1, 1]} : vector<8x32xf32> to vector<8x8xf32>
    %10 = vector.extract_strided_slice %8 {offsets = [0, 8], sizes = [8, 8], strides = [1, 1]} : vector<8x32xf32> to vector<8x8xf32>
    %11 = vector.extract_strided_slice %8 {offsets = [0, 16], sizes = [8, 8], strides = [1, 1]} : vector<8x32xf32> to vector<8x8xf32>
    %12 = vector.extract_strided_slice %8 {offsets = [0, 24], sizes = [8, 8], strides = [1, 1]} : vector<8x32xf32> to vector<8x8xf32>
    %13 = vector.shape_cast %9 : vector<8x8xf32> to vector<1x8x8xf32>
    %14 = vector.shape_cast %10 : vector<8x8xf32> to vector<1x8x8xf32>
    %15 = vector.shape_cast %11 : vector<8x8xf32> to vector<1x8x8xf32>
    %16 = vector.shape_cast %12 : vector<8x8xf32> to vector<1x8x8xf32>
    %17 = tpu.concatenate %13, %14, %15, %16 in 0 : vector<1x8x8xf32>, vector<1x8x8xf32>, vector<1x8x8xf32>, vector<1x8x8xf32> -> vector<4x8x8xf32>
    %18 = arith.truncf %17 : vector<4x8x8xf32> to vector<4x8x8xbf16>
    %19 = vector.extract_strided_slice %6 {offsets = [0, 64], sizes = [8, 32], strides = [1, 1]} : vector<8x96xf32> to vector<8x32xf32>
    %20 = vector.extract_strided_slice %19 {offsets = [0, 0], sizes = [8, 8], strides = [1, 1]} : vector<8x32xf32> to vector<8x8xf32>
    %21 = vector.extract_strided_slice %19 {offsets = [0, 8], sizes = [8, 8], strides = [1, 1]} : vector<8x32xf32> to vector<8x8xf32>
    %22 = vector.extract_strided_slice %19 {offsets = [0, 16], sizes = [8, 8], strides = [1, 1]} : vector<8x32xf32> to vector<8x8xf32>
    %23 = vector.extract_strided_slice %19 {offsets = [0, 24], sizes = [8, 8], strides = [1, 1]} : vector<8x32xf32> to vector<8x8xf32>
    %24 = vector.shape_cast %20 : vector<8x8xf32> to vector<1x8x8xf32>
    %25 = vector.shape_cast %21 : vector<8x8xf32> to vector<1x8x8xf32>
    %26 = vector.shape_cast %22 : vector<8x8xf32> to vector<1x8x8xf32>
    %27 = vector.shape_cast %23 : vector<8x8xf32> to vector<1x8x8xf32>
    %28 = tpu.concatenate %24, %25, %26, %27 in 0 : vector<1x8x8xf32>, vector<1x8x8xf32>, vector<1x8x8xf32>, vector<1x8x8xf32> -> vector<4x8x8xf32>
    %29 = arith.truncf %28 : vector<4x8x8xf32> to vector<4x8x8xbf16>
    %30 = arith.extf %1 : vector<8x32xbf16> to vector<8x32xf32>
    %31 = vector.extract_strided_slice %7 {offsets = [0, 0], sizes = [8, 8], strides = [1, 1]} : vector<8x32xf32> to vector<8x8xf32>
    %32 = vector.extract_strided_slice %7 {offsets = [0, 8], sizes = [8, 8], strides = [1, 1]} : vector<8x32xf32> to vector<8x8xf32>
    %33 = vector.extract_strided_slice %7 {offsets = [0, 16], sizes = [8, 8], strides = [1, 1]} : vector<8x32xf32> to vector<8x8xf32>
    %34 = vector.extract_strided_slice %7 {offsets = [0, 24], sizes = [8, 8], strides = [1, 1]} : vector<8x32xf32> to vector<8x8xf32>
    %35 = vector.shape_cast %31 : vector<8x8xf32> to vector<1x8x8xf32>
    %36 = vector.shape_cast %32 : vector<8x8xf32> to vector<1x8x8xf32>
    %37 = vector.shape_cast %33 : vector<8x8xf32> to vector<1x8x8xf32>
    %38 = vector.shape_cast %34 : vector<8x8xf32> to vector<1x8x8xf32>
    %39 = tpu.concatenate %35, %36, %37, %38 in 0 : vector<1x8x8xf32>, vector<1x8x8xf32>, vector<1x8x8xf32>, vector<1x8x8xf32> -> vector<4x8x8xf32>
    %40 = arith.truncf %39 : vector<4x8x8xf32> to vector<4x8x8xbf16>
    "tpu.trace_start"() <{level = 10 : i32, message = "hqd,hkd->hqk"}> : () -> ()
    %cst_6 = arith.constant dense<0.000000e+00> : vector<4x8x8xf32>
    %41 = tpu.matmul %40, %18, %cst_6 {dimension_numbers = #tpu.dot_dimension_numbers<[2], [2], [1], [1], [0, 0, 0, 1, 1, 1], [0], [0]>} : vector<4x8x8xbf16>, vector<4x8x8xbf16>, vector<4x8x8xf32> -> vector<4x8x8xf32>
    "tpu.trace_stop"() : () -> ()
    %cst_7 = arith.constant dense<0xFF800000> : vector<4x8xf32>
    %42 = vector.multi_reduction <maximumf>, %41, %cst_7 [2] : vector<4x8x8xf32> to vector<4x8xf32>
    %43 = vector.shape_cast %42 : vector<4x8xf32> to vector<4x8x1xf32>
    %44 = vector.broadcast %43 : vector<4x8x1xf32> to vector<4x8x8xf32>
    %45 = arith.subf %41, %44 : vector<4x8x8xf32>
    %46 = arith.truncf %45 : vector<4x8x8xf32> to vector<4x8x8xbf16>
    %47 = math.exp %46 : vector<4x8x8xbf16>
    %48 = arith.extf %47 : vector<4x8x8xbf16> to vector<4x8x8xf32>
    %cst_8 = arith.constant dense<0.000000e+00> : vector<4x8xf32>
    %49 = vector.multi_reduction <add>, %48, %cst_8 [2] : vector<4x8x8xf32> to vector<4x8xf32>
    %50 = vector.shape_cast %49 : vector<4x8xf32> to vector<4x8x1xf32>
    %51 = tpu.reciprocal %50 {approx = true} : vector<4x8x1xf32> -> vector<4x8x1xf32>
    %52 = arith.truncf %51 : vector<4x8x1xf32> to vector<4x8x1xbf16>
    %53 = vector.broadcast %52 : vector<4x8x1xbf16> to vector<4x8x8xbf16>
    %54 = arith.mulf %47, %53 : vector<4x8x8xbf16>
    "tpu.trace_start"() <{level = 10 : i32, message = "hqk,hkd->hqd"}> : () -> ()
    %cst_9 = arith.constant dense<0.000000e+00> : vector<4x8x8xf32>
    %55 = tpu.matmul %54, %29, %cst_9 {dimension_numbers = #tpu.dot_dimension_numbers<[2], [1], [1], [2], [0, 0, 0, 1, 1, 2], [0], [0]>} : vector<4x8x8xbf16>, vector<4x8x8xbf16>, vector<4x8x8xf32> -> vector<4x8x8xf32>
    "tpu.trace_stop"() : () -> ()
    %56 = vector.extract_strided_slice %55 {offsets = [0, 0, 0], sizes = [1, 8, 8], strides = [1, 1, 1]} : vector<4x8x8xf32> to vector<1x8x8xf32>
    %57 = vector.shape_cast %56 : vector<1x8x8xf32> to vector<8x8xf32>
    %58 = vector.extract_strided_slice %55 {offsets = [1, 0, 0], sizes = [1, 8, 8], strides = [1, 1, 1]} : vector<4x8x8xf32> to vector<1x8x8xf32>
    %59 = vector.shape_cast %58 : vector<1x8x8xf32> to vector<8x8xf32>
    %60 = vector.extract_strided_slice %55 {offsets = [2, 0, 0], sizes = [1, 8, 8], strides = [1, 1, 1]} : vector<4x8x8xf32> to vector<1x8x8xf32>
    %61 = vector.shape_cast %60 : vector<1x8x8xf32> to vector<8x8xf32>
    %62 = vector.extract_strided_slice %55 {offsets = [3, 0, 0], sizes = [1, 8, 8], strides = [1, 1, 1]} : vector<4x8x8xf32> to vector<1x8x8xf32>
    %63 = vector.shape_cast %62 : vector<1x8x8xf32> to vector<8x8xf32>
    %64 = tpu.concatenate %57, %59, %61, %63 in 1 : vector<8x8xf32>, vector<8x8xf32>, vector<8x8xf32>, vector<8x8xf32> -> vector<8x32xf32>
    %65 = arith.truncf %64 : vector<8x32xf32> to vector<8x32xbf16>
    %c0_10 = arith.constant 0 : index
    %c0_11 = arith.constant 0 : index
    %66 = vector.load %arg5[%c0_10, %c0_11] : memref<32x32xbf16, #tpu.memory_space<vmem>>, vector<32x32xbf16>
    %cst_12 = arith.constant dense<0.000000e+00> : vector<8x32xf32>
    %67 = tpu.matmul %65, %66, %cst_12 {dimension_numbers = #tpu.dot_dimension_numbers<[1], [0], [0], [1], [0, 0, 1, 1], [], []>} : vector<8x32xbf16>, vector<32x32xbf16>, vector<8x32xf32> -> vector<8x32xf32>
    %c0_13 = arith.constant 0 : index
    %c0_14 = arith.constant 0 : index
    %68 = vector.load %arg6[%c0_13, %c0_14] : memref<1x32xf32, #tpu.memory_space<vmem>>, vector<1x32xf32>
    %69 = vector.broadcast %68 : vector<1x32xf32> to vector<8x32xf32>
    %70 = arith.addf %67, %69 : vector<8x32xf32>
    %71 = arith.addf %30, %70 : vector<8x32xf32>
    %c0_15 = arith.constant 0 : index
    %c0_16 = arith.constant 0 : index
    %72 = vector.load %arg7[%c0_15, %c0_16] : memref<1x32xf32, #tpu.memory_space<vmem>>, vector<1x32xf32>
    %c0_17 = arith.constant 0 : index
    %c0_18 = arith.constant 0 : index
    %73 = vector.load %arg8[%c0_17, %c0_18] : memref<1x32xf32, #tpu.memory_space<vmem>>, vector<1x32xf32>
    %cst_19 = arith.constant dense<0.000000e+00> : vector<8xf32>
    %74 = vector.multi_reduction <add>, %71, %cst_19 [1] : vector<8x32xf32> to vector<8xf32>
    %75 = vector.shape_cast %74 : vector<8xf32> to vector<8x1xf32>
    %cst_20 = arith.constant 3.200000e+01 : f32
    %76 = vector.broadcast %cst_20 : f32 to vector<8x1xf32>
    %77 = arith.divf %75, %76 : vector<8x1xf32>
    %78 = vector.broadcast %77 : vector<8x1xf32> to vector<8x32xf32>
    %79 = arith.subf %71, %78 : vector<8x32xf32>
    %80 = arith.mulf %79, %79 : vector<8x32xf32>
    %cst_21 = arith.constant dense<0.000000e+00> : vector<8xf32>
    %81 = vector.multi_reduction <add>, %80, %cst_21 [1] : vector<8x32xf32> to vector<8xf32>
    %82 = vector.shape_cast %81 : vector<8xf32> to vector<8x1xf32>
    %cst_22 = arith.constant 3.200000e+01 : f32
    %83 = vector.broadcast %cst_22 : f32 to vector<8x1xf32>
    %84 = arith.divf %82, %83 : vector<8x1xf32>
    %85 = vector.broadcast %77 : vector<8x1xf32> to vector<8x32xf32>
    %86 = arith.subf %71, %85 : vector<8x32xf32>
    %cst_23 = arith.constant 9.99999974E-6 : f32
    %87 = vector.broadcast %cst_23 : f32 to vector<8x1xf32>
    %88 = arith.addf %84, %87 : vector<8x1xf32>
    %89 = math.rsqrt %88 : vector<8x1xf32>
    %90 = vector.broadcast %89 : vector<8x1xf32> to vector<8x32xf32>
    %91 = arith.mulf %86, %90 : vector<8x32xf32>
    %92 = vector.broadcast %72 : vector<1x32xf32> to vector<8x32xf32>
    %93 = arith.mulf %91, %92 : vector<8x32xf32>
    %94 = vector.broadcast %73 : vector<1x32xf32> to vector<8x32xf32>
    %95 = arith.addf %93, %94 : vector<8x32xf32>
    %96 = arith.truncf %95 : vector<8x32xf32> to vector<8x32xbf16>
    %c0_24 = arith.constant 0 : index
    %c0_25 = arith.constant 0 : index
    %97 = vector.load %arg9[%c0_24, %c0_25] : memref<32x64xbf16, #tpu.memory_space<vmem>>, vector<32x64xbf16>
    %cst_26 = arith.constant dense<0.000000e+00> : vector<8x64xf32>
    %98 = tpu.matmul %96, %97, %cst_26 {dimension_numbers = #tpu.dot_dimension_numbers<[1], [0], [0], [1], [0, 0, 1, 1], [], []>} : vector<8x32xbf16>, vector<32x64xbf16>, vector<8x64xf32> -> vector<8x64xf32>
    %c0_27 = arith.constant 0 : index
    %c0_28 = arith.constant 0 : index
    %99 = vector.load %arg10[%c0_27, %c0_28] : memref<1x64xf32, #tpu.memory_space<vmem>>, vector<1x64xf32>
    %100 = vector.broadcast %99 : vector<1x64xf32> to vector<8x64xf32>
    %101 = arith.addf %98, %100 : vector<8x64xf32>
    %cst_29 = arith.constant 0.000000e+00 : f32
    %102 = vector.broadcast %cst_29 : f32 to vector<8x64xf32>
    %103 = arith.maximumf %101, %102 : vector<8x64xf32>
    %104 = arith.truncf %103 : vector<8x64xf32> to vector<8x64xbf16>
    %c0_30 = arith.constant 0 : index
    %c0_31 = arith.constant 0 : index
    %105 = vector.load %arg11[%c0_30, %c0_31] : memref<64x32xbf16, #tpu.memory_space<vmem>>, vector<64x32xbf16>
    %cst_32 = arith.constant dense<0.000000e+00> : vector<8x32xf32>
    %106 = tpu.matmul %104, %105, %cst_32 {dimension_numbers = #tpu.dot_dimension_numbers<[1], [0], [0], [1], [0, 0, 1, 1], [], []>} : vector<8x64xbf16>, vector<64x32xbf16>, vector<8x32xf32> -> vector<8x32xf32>
    %c0_33 = arith.constant 0 : index
    %c0_34 = arith.constant 0 : index
    %107 = vector.load %arg12[%c0_33, %c0_34] : memref<1x32xf32, #tpu.memory_space<vmem>>, vector<1x32xf32>
    %108 = vector.broadcast %107 : vector<1x32xf32> to vector<8x32xf32>
    %109 = arith.addf %106, %108 : vector<8x32xf32>
    %110 = arith.addf %95, %109 : vector<8x32xf32>
    %c0_35 = arith.constant 0 : index
    %c0_36 = arith.constant 0 : index
    %111 = vector.load %arg13[%c0_35, %c0_36] : memref<1x32xf32, #tpu.memory_space<vmem>>, vector<1x32xf32>
    %c0_37 = arith.constant 0 : index
    %c0_38 = arith.constant 0 : index
    %112 = vector.load %arg14[%c0_37, %c0_38] : memref<1x32xf32, #tpu.memory_space<vmem>>, vector<1x32xf32>
    %cst_39 = arith.constant dense<0.000000e+00> : vector<8xf32>
    %113 = vector.multi_reduction <add>, %110, %cst_39 [1] : vector<8x32xf32> to vector<8xf32>
    %114 = vector.shape_cast %113 : vector<8xf32> to vector<8x1xf32>
    %cst_40 = arith.constant 3.200000e+01 : f32
    %115 = vector.broadcast %cst_40 : f32 to vector<8x1xf32>
    %116 = arith.divf %114, %115 : vector<8x1xf32>
    %117 = vector.broadcast %116 : vector<8x1xf32> to vector<8x32xf32>
    %118 = arith.subf %110, %117 : vector<8x32xf32>
    %119 = arith.mulf %118, %118 : vector<8x32xf32>
    %cst_41 = arith.constant dense<0.000000e+00> : vector<8xf32>
    %120 = vector.multi_reduction <add>, %119, %cst_41 [1] : vector<8x32xf32> to vector<8xf32>
    %121 = vector.shape_cast %120 : vector<8xf32> to vector<8x1xf32>
    %cst_42 = arith.constant 3.200000e+01 : f32
    %122 = vector.broadcast %cst_42 : f32 to vector<8x1xf32>
    %123 = arith.divf %121, %122 : vector<8x1xf32>
    %124 = vector.broadcast %116 : vector<8x1xf32> to vector<8x32xf32>
    %125 = arith.subf %110, %124 : vector<8x32xf32>
    %cst_43 = arith.constant 9.99999974E-6 : f32
    %126 = vector.broadcast %cst_43 : f32 to vector<8x1xf32>
    %127 = arith.addf %123, %126 : vector<8x1xf32>
    %128 = math.rsqrt %127 : vector<8x1xf32>
    %129 = vector.broadcast %128 : vector<8x1xf32> to vector<8x32xf32>
    %130 = arith.mulf %125, %129 : vector<8x32xf32>
    %131 = vector.broadcast %111 : vector<1x32xf32> to vector<8x32xf32>
    %132 = arith.mulf %130, %131 : vector<8x32xf32>
    %133 = vector.broadcast %112 : vector<1x32xf32> to vector<8x32xf32>
    %134 = arith.addf %132, %133 : vector<8x32xf32>
    %c0_44 = arith.constant 0 : index
    %c0_45 = arith.constant 0 : index
    %c0_46 = arith.constant 0 : index
    %135 = vector.load %arg15[%c0_44, %c0_45, %c0_46] : memref<1x8x32xf32, #tpu.memory_space<vmem>>, vector<1x8x32xf32>
    %136 = vector.shape_cast %135 : vector<1x8x32xf32> to vector<8x32xf32>
    %137 = vector.shape_cast %134 : vector<8x32xf32> to vector<1x8x32xf32>
    tpu.vector_store %arg15[%c0_44, %c0_45, %c0_46], %137 {strides = array<i32>} : memref<1x8x32xf32, #tpu.memory_space<vmem>>, vector<1x8x32xf32>,
    return
  }
  func.func @transform_0(%arg0: i32, %arg1: i32) -> (i32, i32, i32) {
    %c0_i32 = arith.constant 0 : i32
    %c0_i32_0 = arith.constant 0 : i32
    return %arg0, %arg1, %c0_i32 : i32, i32, i32
  }
  func.func @transform_1(%arg0: i32, %arg1: i32) -> (i32, i32) {
    %c0_i32 = arith.constant 0 : i32
    %c0_i32_0 = arith.constant 0 : i32
    %c0_i32_1 = arith.constant 0 : i32
    return %c0_i32, %c0_i32_0 : i32, i32
  }
  func.func @transform_2(%arg0: i32, %arg1: i32) -> (i32, i32) {
    %c0_i32 = arith.constant 0 : i32
    %c0_i32_0 = arith.constant 0 : i32
    %c0_i32_1 = arith.constant 0 : i32
    return %c0_i32, %c0_i32_0 : i32, i32
  }
  func.func @transform_3(%arg0: i32, %arg1: i32) -> (i32, i32) {
    %c0_i32 = arith.constant 0 : i32
    %c0_i32_0 = arith.constant 0 : i32
    %c0_i32_1 = arith.constant 0 : i32
    return %c0_i32, %c0_i32_0 : i32, i32
  }
  func.func @transform_4(%arg0: i32, %arg1: i32) -> (i32, i32) {
    %c0_i32 = arith.constant 0 : i32
    %c0_i32_0 = arith.constant 0 : i32
    %c0_i32_1 = arith.constant 0 : i32
    return %c0_i32, %c0_i32_0 : i32, i32
  }
  func.func @transform_5(%arg0: i32, %arg1: i32) -> (i32, i32) {
    %c0_i32 = arith.constant 0 : i32
    %c0_i32_0 = arith.constant 0 : i32
    %c0_i32_1 = arith.constant 0 : i32
    return %c0_i32, %c0_i32_0 : i32, i32
  }
  func.func @transform_6(%arg0: i32, %arg1: i32) -> (i32, i32) {
    %c0_i32 = arith.constant 0 : i32
    %c0_i32_0 = arith.constant 0 : i32
    %c0_i32_1 = arith.constant 0 : i32
    return %c0_i32, %c0_i32_0 : i32, i32
  }
  func.func @transform_7(%arg0: i32, %arg1: i32) -> (i32, i32) {
    %c0_i32 = arith.constant 0 : i32
    %c0_i32_0 = arith.constant 0 : i32
    %c0_i32_1 = arith.constant 0 : i32
    return %c0_i32, %c0_i32_0 : i32, i32
  }
  func.func @transform_8(%arg0: i32, %arg1: i32) -> (i32, i32) {
    %c0_i32 = arith.constant 0 : i32
    %c0_i32_0 = arith.constant 0 : i32
    %c0_i32_1 = arith.constant 0 : i32
    return %c0_i32, %c0_i32_0 : i32, i32
  }
  func.func @transform_9(%arg0: i32, %arg1: i32) -> (i32, i32) {
    %c0_i32 = arith.constant 0 : i32
    %c0_i32_0 = arith.constant 0 : i32
    %c0_i32_1 = arith.constant 0 : i32
    return %c0_i32, %c0_i32_0 : i32, i32
  }
  func.func @transform_10(%arg0: i32, %arg1: i32) -> (i32, i32) {
    %c0_i32 = arith.constant 0 : i32
    %c0_i32_0 = arith.constant 0 : i32
    %c0_i32_1 = arith.constant 0 : i32
    return %c0_i32, %c0_i32_0 : i32, i32
  }
  func.func @transform_11(%arg0: i32, %arg1: i32) -> (i32, i32) {
    %c0_i32 = arith.constant 0 : i32
    %c0_i32_0 = arith.constant 0 : i32
    %c0_i32_1 = arith.constant 0 : i32
    return %c0_i32, %c0_i32_0 : i32, i32
  }
  func.func @transform_12(%arg0: i32, %arg1: i32) -> (i32, i32) {
    %c0_i32 = arith.constant 0 : i32
    %c0_i32_0 = arith.constant 0 : i32
    %c0_i32_1 = arith.constant 0 : i32
    return %c0_i32, %c0_i32_0 : i32, i32
  }
  func.func @transform_13(%arg0: i32, %arg1: i32) -> (i32, i32, i32) {
    %c0_i32 = arith.constant 0 : i32
    %c0_i32_0 = arith.constant 0 : i32
    return %arg0, %arg1, %c0_i32 : i32, i32, i32
  }
}

module attributes {stable_mosaic.version = 11 : i64} {
  func.func @_block_kernel_single_tile(%arg0: i32, %arg1: i32, %arg2: memref<1x8x32xbf16, #tpu.memory_space<vmem>>, %arg3: memref<32x96xbf16, #tpu.memory_space<vmem>>, %arg4: memref<1x96xf32, #tpu.memory_space<vmem>>, %arg5: memref<32x32xbf16, #tpu.memory_space<vmem>>, %arg6: memref<1x32xf32, #tpu.memory_space<vmem>>, %arg7: memref<1x32xf32, #tpu.memory_space<vmem>>, %arg8: memref<1x32xf32, #tpu.memory_space<vmem>>, %arg9: memref<32x64xbf16, #tpu.memory_space<vmem>>, %arg10: memref<1x64xf32, #tpu.memory_space<vmem>>, %arg11: memref<64x32xbf16, #tpu.memory_space<vmem>>, %arg12: memref<1x32xf32, #tpu.memory_space<vmem>>, %arg13: memref<1x32xf32, #tpu.memory_space<vmem>>, %arg14: memref<1x32xf32, #tpu.memory_space<vmem>>, %arg15: memref<1x8x32xf32, #tpu.memory_space<vmem>>) attributes {dimension_semantics = [#tpu.dimension_semantics<parallel>, #tpu.dimension_semantics<parallel>], iteration_bounds = array<i64: 2, 1>, scalar_prefetch = 0 : i64, scratch_operands = 0 : i64, tpu.core_type = #tpu.core_type<tc>, window_params = [{transform_indices = @transform_0, window_bounds = array<i64: 1, 8, 32>}, {pipeline_mode = #tpu.pipeline_mode<synchronous>, transform_indices = @transform_1, window_bounds = array<i64: 32, 96>}, {pipeline_mode = #tpu.pipeline_mode<synchronous>, transform_indices = @transform_2, window_bounds = array<i64: 1, 96>}, {pipeline_mode = #tpu.pipeline_mode<synchronous>, transform_indices = @transform_3, window_bounds = array<i64: 32, 32>}, {pipeline_mode = #tpu.pipeline_mode<synchronous>, transform_indices = @transform_4, window_bounds = array<i64: 1, 32>}, {pipeline_mode = #tpu.pipeline_mode<synchronous>, transform_indices = @transform_5, window_bounds = array<i64: 1, 32>}, {pipeline_mode = #tpu.pipeline_mode<synchronous>, transform_indices = @transform_6, window_bounds = array<i64: 1, 32>}, {pipeline_mode = #tpu.pipeline_mode<synchronous>, transform_indices = @transform_7, window_bounds = array<i64: 32, 64>}, {pipeline_mode = #tpu.pipeline_mode<synchronous>, transform_indices = @transform_8, window_bounds = array<i64: 1, 64>}, {pipeline_mode = #tpu.pipeline_mode<synchronous>, transform_indices = @transform_9, window_bounds = array<i64: 64, 32>}, {pipeline_mode = #tpu.pipeline_mode<synchronous>, transform_indices = @transform_10, window_bounds = array<i64: 1, 32>}, {pipeline_mode = #tpu.pipeline_mode<synchronous>, transform_indices = @transform_11, window_bounds = array<i64: 1, 32>}, {pipeline_mode = #tpu.pipeline_mode<synchronous>, transform_indices = @transform_12, window_bounds = array<i64: 1, 32>}, {transform_indices = @transform_13, window_bounds = array<i64: 1, 8, 32>}]} {
    %c0 = arith.constant 0 : index
    %c0_0 = arith.constant 0 : index
    %c0_1 = arith.constant 0 : index
    %0 = vector.load %arg2[%c0, %c0_0, %c0_1] : memref<1x8x32xbf16, #tpu.memory_space<vmem>>, vector<1x8x32xbf16>
    %1 = vector.shape_cast %0 : vector<1x8x32xbf16> to vector<8x32xbf16>
    %c0_2 = arith.constant 0 : index
    %c0_3 = arith.constant 0 : index
    %2 = vector.load %arg3[%c0_2, %c0_3] : memref<32x96xbf16, #tpu.memory_space<vmem>>, vector<32x96xbf16>
    %cst = arith.constant dense<0.000000e+00> : vector<8x96xf32>
    %3 = tpu.matmul %1, %2, %cst {dimension_numbers = #tpu.dot_dimension_numbers<[1], [0], [0], [1], [0, 0, 1, 1], [], []>} : vector<8x32xbf16>, vector<32x96xbf16>, vector<8x96xf32> -> vector<8x96xf32>
    %c0_4 = arith.constant 0 : index
    %c0_5 = arith.constant 0 : index
    %4 = vector.load %arg4[%c0_4, %c0_5] : memref<1x96xf32, #tpu.memory_space<vmem>>, vector<1x96xf32>
    %5 = vector.broadcast %4 : vector<1x96xf32> to vector<8x96xf32>
    %6 = arith.addf %3, %5 : vector<8x96xf32>
    %7 = vector.extract_strided_slice %6 {offsets = [0, 0], sizes = [8, 32], strides = [1, 1]} : vector<8x96xf32> to vector<8x32xf32>
    %8 = vector.extract_strided_slice %6 {offsets = [0, 32], sizes = [8, 32], strides = [1, 1]} : vector<8x96xf32> to vector<8x32xf32>
    %9 = vector.extract_strided_slice %8 {offsets = [0, 0], sizes = [8, 8], strides = [1, 1]} : vector<8x32xf32> to vector<8x8xf32>
    %10 = vector.extract_strided_slice %8 {offsets = [0, 8], sizes = [8, 8], strides = [1, 1]} : vector<8x32xf32> to vector<8x8xf32>
    %11 = vector.extract_strided_slice %8 {offsets = [0, 16], sizes = [8, 8], strides = [1, 1]} : vector<8x32xf32> to vector<8x8xf32>
    %12 = vector.extract_strided_slice %8 {offsets = [0, 24], sizes = [8, 8], strides = [1, 1]} : vector<8x32xf32> to vector<8x8xf32>
    %13 = vector.shape_cast %9 : vector<8x8xf32> to vector<1x8x8xf32>
    %14 = vector.shape_cast %10 : vector<8x8xf32> to vector<1x8x8xf32>
    %15 = vector.shape_cast %11 : vector<8x8xf32> to vector<1x8x8xf32>
    %16 = vector.shape_cast %12 : vector<8x8xf32> to vector<1x8x8xf32>
    %17 = tpu.concatenate %13, %14, %15, %16 in 0 : vector<1x8x8xf32>, vector<1x8x8xf32>, vector<1x8x8xf32>, vector<1x8x8xf32> -> vector<4x8x8xf32>
    %18 = arith.truncf %17 : vector<4x8x8xf32> to vector<4x8x8xbf16>
    %19 = vector.extract_strided_slice %6 {offsets = [0, 64], sizes = [8, 32], strides = [1, 1]} : vector<8x96xf32> to vector<8x32xf32>
    %20 = vector.extract_strided_slice %19 {offsets = [0, 0], sizes = [8, 8], strides = [1, 1]} : vector<8x32xf32> to vector<8x8xf32>
    %21 = vector.extract_strided_slice %19 {offsets = [0, 8], sizes = [8, 8], strides = [1, 1]} : vector<8x32xf32> to vector<8x8xf32>
    %22 = vector.extract_strided_slice %19 {offsets = [0, 16], sizes = [8, 8], strides = [1, 1]} : vector<8x32xf32> to vector<8x8xf32>
    %23 = vector.extract_strided_slice %19 {offsets = [0, 24], sizes = [8, 8], strides = [1, 1]} : vector<8x32xf32> to vector<8x8xf32>
    %24 = vector.shape_cast %20 : vector<8x8xf32> to vector<1x8x8xf32>
    %25 = vector.shape_cast %21 : vector<8x8xf32> to vector<1x8x8xf32>
    %26 = vector.shape_cast %22 : vector<8x8xf32> to vector<1x8x8xf32>
    %27 = vector.shape_cast %23 : vector<8x8xf32> to vector<1x8x8xf32>
    %28 = tpu.concatenate %24, %25, %26, %27 in 0 : vector<1x8x8xf32>, vector<1x8x8xf32>, vector<1x8x8xf32>, vector<1x8x8xf32> -> vector<4x8x8xf32>
    %29 = arith.truncf %28 : vector<4x8x8xf32> to vector<4x8x8xbf16>
    %30 = arith.extf %1 : vector<8x32xbf16> to vector<8x32xf32>
    %31 = vector.extract_strided_slice %7 {offsets = [0, 0], sizes = [8, 8], strides = [1, 1]} : vector<8x32xf32> to vector<8x8xf32>
    %32 = vector.extract_strided_slice %7 {offsets = [0, 8], sizes = [8, 8], strides = [1, 1]} : vector<8x32xf32> to vector<8x8xf32>
    %33 = vector.extract_strided_slice %7 {offsets = [0, 16], sizes = [8, 8], strides = [1, 1]} : vector<8x32xf32> to vector<8x8xf32>
    %34 = vector.extract_strided_slice %7 {offsets = [0, 24], sizes = [8, 8], strides = [1, 1]} : vector<8x32xf32> to vector<8x8xf32>
    %35 = vector.shape_cast %31 : vector<8x8xf32> to vector<1x8x8xf32>
    %36 = vector.shape_cast %32 : vector<8x8xf32> to vector<1x8x8xf32>
    %37 = vector.shape_cast %33 : vector<8x8xf32> to vector<1x8x8xf32>
    %38 = vector.shape_cast %34 : vector<8x8xf32> to vector<1x8x8xf32>
    %39 = tpu.concatenate %35, %36, %37, %38 in 0 : vector<1x8x8xf32>, vector<1x8x8xf32>, vector<1x8x8xf32>, vector<1x8x8xf32> -> vector<4x8x8xf32>
    %40 = arith.truncf %39 : vector<4x8x8xf32> to vector<4x8x8xbf16>
    "tpu.trace_start"() <{level = 10 : i32, message = "hqd,hkd->hqk"}> : () -> ()
    %cst_6 = arith.constant dense<0.000000e+00> : vector<4x8x8xf32>
    %41 = tpu.matmul %40, %18, %cst_6 {dimension_numbers = #tpu.dot_dimension_numbers<[2], [2], [1], [1], [0, 0, 0, 1, 1, 1], [0], [0]>} : vector<4x8x8xbf16>, vector<4x8x8xbf16>, vector<4x8x8xf32> -> vector<4x8x8xf32>
    "tpu.trace_stop"() : () -> ()
    %cst_7 = arith.constant dense<0xFF800000> : vector<4x8xf32>
    %42 = vector.multi_reduction <maximumf>, %41, %cst_7 [2] : vector<4x8x8xf32> to vector<4x8xf32>
    %43 = vector.shape_cast %42 : vector<4x8xf32> to vector<4x8x1xf32>
    %44 = vector.broadcast %43 : vector<4x8x1xf32> to vector<4x8x8xf32>
    %45 = arith.subf %41, %44 : vector<4x8x8xf32>
    %46 = arith.truncf %45 : vector<4x8x8xf32> to vector<4x8x8xbf16>
    %47 = math.exp %46 : vector<4x8x8xbf16>
    %48 = arith.extf %47 : vector<4x8x8xbf16> to vector<4x8x8xf32>
    %cst_8 = arith.constant dense<0.000000e+00> : vector<4x8xf32>
    %49 = vector.multi_reduction <add>, %48, %cst_8 [2] : vector<4x8x8xf32> to vector<4x8xf32>
    %50 = vector.shape_cast %49 : vector<4x8xf32> to vector<4x8x1xf32>
    %51 = tpu.reciprocal %50 {approx = true} : vector<4x8x1xf32> -> vector<4x8x1xf32>
    %52 = arith.truncf %51 : vector<4x8x1xf32> to vector<4x8x1xbf16>
    %53 = vector.broadcast %52 : vector<4x8x1xbf16> to vector<4x8x8xbf16>
    %54 = arith.mulf %47, %53 : vector<4x8x8xbf16>
    "tpu.trace_start"() <{level = 10 : i32, message = "hqk,hkd->hqd"}> : () -> ()
    %cst_9 = arith.constant dense<0.000000e+00> : vector<4x8x8xf32>
    %55 = tpu.matmul %54, %29, %cst_9 {dimension_numbers = #tpu.dot_dimension_numbers<[2], [1], [1], [2], [0, 0, 0, 1, 1, 2], [0], [0]>} : vector<4x8x8xbf16>, vector<4x8x8xbf16>, vector<4x8x8xf32> -> vector<4x8x8xf32>
    "tpu.trace_stop"() : () -> ()
    %56 = vector.extract_strided_slice %55 {offsets = [0, 0, 0], sizes = [1, 8, 8], strides = [1, 1, 1]} : vector<4x8x8xf32> to vector<1x8x8xf32>
    %57 = vector.shape_cast %56 : vector<1x8x8xf32> to vector<8x8xf32>
    %58 = vector.extract_strided_slice %55 {offsets = [1, 0, 0], sizes = [1, 8, 8], strides = [1, 1, 1]} : vector<4x8x8xf32> to vector<1x8x8xf32>
    %59 = vector.shape_cast %58 : vector<1x8x8xf32> to vector<8x8xf32>
    %60 = vector.extract_strided_slice %55 {offsets = [2, 0, 0], sizes = [1, 8, 8], strides = [1, 1, 1]} : vector<4x8x8xf32> to vector<1x8x8xf32>
    %61 = vector.shape_cast %60 : vector<1x8x8xf32> to vector<8x8xf32>
    %62 = vector.extract_strided_slice %55 {offsets = [3, 0, 0], sizes = [1, 8, 8], strides = [1, 1, 1]} : vector<4x8x8xf32> to vector<1x8x8xf32>
    %63 = vector.shape_cast %62 : vector<1x8x8xf32> to vector<8x8xf32>
    %64 = tpu.concatenate %57, %59, %61, %63 in 1 : vector<8x8xf32>, vector<8x8xf32>, vector<8x8xf32>, vector<8x8xf32> -> vector<8x32xf32>
    %65 = arith.truncf %64 : vector<8x32xf32> to vector<8x32xbf16>
    %c0_10 = arith.constant 0 : index
    %c0_11 = arith.constant 0 : index
    %66 = vector.load %arg5[%c0_10, %c0_11] : memref<32x32xbf16, #tpu.memory_space<vmem>>, vector<32x32xbf16>
    %cst_12 = arith.constant dense<0.000000e+00> : vector<8x32xf32>
    %67 = tpu.matmul %65, %66, %cst_12 {dimension_numbers = #tpu.dot_dimension_numbers<[1], [0], [0], [1], [0, 0, 1, 1], [], []>} : vector<8x32xbf16>, vector<32x32xbf16>, vector<8x32xf32> -> vector<8x32xf32>
    %c0_13 = arith.constant 0 : index
    %c0_14 = arith.constant 0 : index
    %68 = vector.load %arg6[%c0_13, %c0_14] : memref<1x32xf32, #tpu.memory_space<vmem>>, vector<1x32xf32>
    %69 = vector.broadcast %68 : vector<1x32xf32> to vector<8x32xf32>
    %70 = arith.addf %67, %69 : vector<8x32xf32>
    %71 = arith.addf %30, %70 : vector<8x32xf32>
    %c0_15 = arith.constant 0 : index
    %c0_16 = arith.constant 0 : index
    %72 = vector.load %arg7[%c0_15, %c0_16] : memref<1x32xf32, #tpu.memory_space<vmem>>, vector<1x32xf32>
    %c0_17 = arith.constant 0 : index
    %c0_18 = arith.constant 0 : index
    %73 = vector.load %arg8[%c0_17, %c0_18] : memref<1x32xf32, #tpu.memory_space<vmem>>, vector<1x32xf32>
    %cst_19 = arith.constant dense<0.000000e+00> : vector<8xf32>
    %74 = vector.multi_reduction <add>, %71, %cst_19 [1] : vector<8x32xf32> to vector<8xf32>
    %75 = vector.shape_cast %74 : vector<8xf32> to vector<8x1xf32>
    %cst_20 = arith.constant 3.200000e+01 : f32
    %76 = vector.broadcast %cst_20 : f32 to vector<8x1xf32>
    %77 = arith.divf %75, %76 : vector<8x1xf32>
    %78 = vector.broadcast %77 : vector<8x1xf32> to vector<8x32xf32>
    %79 = arith.subf %71, %78 : vector<8x32xf32>
    %80 = arith.mulf %79, %79 : vector<8x32xf32>
    %cst_21 = arith.constant dense<0.000000e+00> : vector<8xf32>
    %81 = vector.multi_reduction <add>, %80, %cst_21 [1] : vector<8x32xf32> to vector<8xf32>
    %82 = vector.shape_cast %81 : vector<8xf32> to vector<8x1xf32>
    %cst_22 = arith.constant 3.200000e+01 : f32
    %83 = vector.broadcast %cst_22 : f32 to vector<8x1xf32>
    %84 = arith.divf %82, %83 : vector<8x1xf32>
    %85 = vector.broadcast %77 : vector<8x1xf32> to vector<8x32xf32>
    %86 = arith.subf %71, %85 : vector<8x32xf32>
    %cst_23 = arith.constant 9.99999974E-6 : f32
    %87 = vector.broadcast %cst_23 : f32 to vector<8x1xf32>
    %88 = arith.addf %84, %87 : vector<8x1xf32>
    %89 = math.rsqrt %88 : vector<8x1xf32>
    %90 = vector.broadcast %89 : vector<8x1xf32> to vector<8x32xf32>
    %91 = arith.mulf %86, %90 : vector<8x32xf32>
    %92 = vector.broadcast %72 : vector<1x32xf32> to vector<8x32xf32>
    %93 = arith.mulf %91, %92 : vector<8x32xf32>
    %94 = vector.broadcast %73 : vector<1x32xf32> to vector<8x32xf32>
    %95 = arith.addf %93, %94 : vector<8x32xf32>
    %96 = arith.truncf %95 : vector<8x32xf32> to vector<8x32xbf16>
    %c0_24 = arith.constant 0 : index
    %c0_25 = arith.constant 0 : index
    %97 = vector.load %arg9[%c0_24, %c0_25] : memref<32x64xbf16, #tpu.memory_space<vmem>>, vector<32x64xbf16>
    %cst_26 = arith.constant dense<0.000000e+00> : vector<8x64xf32>
    %98 = tpu.matmul %96, %97, %cst_26 {dimension_numbers = #tpu.dot_dimension_numbers<[1], [0], [0], [1], [0, 0, 1, 1], [], []>} : vector<8x32xbf16>, vector<32x64xbf16>, vector<8x64xf32> -> vector<8x64xf32>
    %c0_27 = arith.constant 0 : index
    %c0_28 = arith.constant 0 : index
    %99 = vector.load %arg10[%c0_27, %c0_28] : memref<1x64xf32, #tpu.memory_space<vmem>>, vector<1x64xf32>
    %100 = vector.broadcast %99 : vector<1x64xf32> to vector<8x64xf32>
    %101 = arith.addf %98, %100 : vector<8x64xf32>
    %cst_29 = arith.constant 0.000000e+00 : f32
    %102 = vector.broadcast %cst_29 : f32 to vector<8x64xf32>
    %103 = arith.maximumf %101, %102 : vector<8x64xf32>
    %104 = arith.truncf %103 : vector<8x64xf32> to vector<8x64xbf16>
    %c0_30 = arith.constant 0 : index
    %c0_31 = arith.constant 0 : index
    %105 = vector.load %arg11[%c0_30, %c0_31] : memref<64x32xbf16, #tpu.memory_space<vmem>>, vector<64x32xbf16>
    %cst_32 = arith.constant dense<0.000000e+00> : vector<8x32xf32>
    %106 = tpu.matmul %104, %105, %cst_32 {dimension_numbers = #tpu.dot_dimension_numbers<[1], [0], [0], [1], [0, 0, 1, 1], [], []>} : vector<8x64xbf16>, vector<64x32xbf16>, vector<8x32xf32> -> vector<8x32xf32>
    %c0_33 = arith.constant 0 : index
    %c0_34 = arith.constant 0 : index
    %107 = vector.load %arg12[%c0_33, %c0_34] : memref<1x32xf32, #tpu.memory_space<vmem>>, vector<1x32xf32>
    %108 = vector.broadcast %107 : vector<1x32xf32> to vector<8x32xf32>
    %109 = arith.addf %106, %108 : vector<8x32xf32>
    %110 = arith.addf %95, %109 : vector<8x32xf32>
    %c0_35 = arith.constant 0 : index
    %c0_36 = arith.constant 0 : index
    %111 = vector.load %arg13[%c0_35, %c0_36] : memref<1x32xf32, #tpu.memory_space<vmem>>, vector<1x32xf32>
    %c0_37 = arith.constant 0 : index
    %c0_38 = arith.constant 0 : index
    %112 = vector.load %arg14[%c0_37, %c0_38] : memref<1x32xf32, #tpu.memory_space<vmem>>, vector<1x32xf32>
    %cst_39 = arith.constant dense<0.000000e+00> : vector<8xf32>
    %113 = vector.multi_reduction <add>, %110, %cst_39 [1] : vector<8x32xf32> to vector<8xf32>
    %114 = vector.shape_cast %113 : vector<8xf32> to vector<8x1xf32>
    %cst_40 = arith.constant 3.200000e+01 : f32
    %115 = vector.broadcast %cst_40 : f32 to vector<8x1xf32>
    %116 = arith.divf %114, %115 : vector<8x1xf32>
    %117 = vector.broadcast %116 : vector<8x1xf32> to vector<8x32xf32>
    %118 = arith.subf %110, %117 : vector<8x32xf32>
    %119 = arith.mulf %118, %118 : vector<8x32xf32>
    %cst_41 = arith.constant dense<0.000000e+00> : vector<8xf32>
    %120 = vector.multi_reduction <add>, %119, %cst_41 [1] : vector<8x32xf32> to vector<8xf32>
    %121 = vector.shape_cast %120 : vector<8xf32> to vector<8x1xf32>
    %cst_42 = arith.constant 3.200000e+01 : f32
    %122 = vector.broadcast %cst_42 : f32 to vector<8x1xf32>
    %123 = arith.divf %121, %122 : vector<8x1xf32>
    %124 = vector.broadcast %116 : vector<8x1xf32> to vector<8x32xf32>
    %125 = arith.subf %110, %124 : vector<8x32xf32>
    %cst_43 = arith.constant 9.99999974E-6 : f32
    %126 = vector.broadcast %cst_43 : f32 to vector<8x1xf32>
    %127 = arith.addf %123, %126 : vector<8x1xf32>
    %128 = math.rsqrt %127 : vector<8x1xf32>
    %129 = vector.broadcast %128 : vector<8x1xf32> to vector<8x32xf32>
    %130 = arith.mulf %125, %129 : vector<8x32xf32>
    %131 = vector.broadcast %111 : vector<1x32xf32> to vector<8x32xf32>
    %132 = arith.mulf %130, %131 : vector<8x32xf32>
    %133 = vector.broadcast %112 : vector<1x32xf32> to vector<8x32xf32>
    %134 = arith.addf %132, %133 : vector<8x32xf32>
    %c0_44 = arith.constant 0 : index
    %c0_45 = arith.constant 0 : index
    %c0_46 = arith.constant 0 : index
    %135 = vector.load %arg15[%c0_44, %c0_45, %c0_46] : memref<1x8x32xf32, #tpu.memory_space<vmem>>, vector<1x8x32xf32>
    %136 = vector.shape_cast %135 : vector<1x8x32xf32> to vector<8x32xf32>
    %137 = vector.shape_cast %134 : vector<8x32xf32> to vector<1x8x32xf32>
    tpu.vector_store %arg15[%c0_44, %c0_45, %c0_46], %137 {strides = array<i32>} : memref<1x8x32xf32, #tpu.memory_space<vmem>>, vector<1x8x32xf32>,
    return
  }
  func.func @transform_0(%arg0: i32, %arg1: i32) -> (i32, i32, i32) {
    %c0_i32 = arith.constant 0 : i32
    %c0_i32_0 = arith.constant 0 : i32
    return %arg0, %arg1, %c0_i32 : i32, i32, i32
  }
  func.func @transform_1(%arg0: i32, %arg1: i32) -> (i32, i32) {
    %c0_i32 = arith.constant 0 : i32
    %c0_i32_0 = arith.constant 0 : i32
    %c0_i32_1 = arith.constant 0 : i32
    return %c0_i32, %c0_i32_0 : i32, i32
  }
  func.func @transform_2(%arg0: i32, %arg1: i32) -> (i32, i32) {
    %c0_i32 = arith.constant 0 : i32
    %c0_i32_0 = arith.constant 0 : i32
    %c0_i32_1 = arith.constant 0 : i32
    return %c0_i32, %c0_i32_0 : i32, i32
  }
  func.func @transform_3(%arg0: i32, %arg1: i32) -> (i32, i32) {
    %c0_i32 = arith.constant 0 : i32
    %c0_i32_0 = arith.constant 0 : i32
    %c0_i32_1 = arith.constant 0 : i32
    return %c0_i32, %c0_i32_0 : i32, i32
  }
  func.func @transform_4(%arg0: i32, %arg1: i32) -> (i32, i32) {
    %c0_i32 = arith.constant 0 : i32
    %c0_i32_0 = arith.constant 0 : i32
    %c0_i32_1 = arith.constant 0 : i32
    return %c0_i32, %c0_i32_0 : i32, i32
  }
  func.func @transform_5(%arg0: i32, %arg1: i32) -> (i32, i32) {
    %c0_i32 = arith.constant 0 : i32
    %c0_i32_0 = arith.constant 0 : i32
    %c0_i32_1 = arith.constant 0 : i32
    return %c0_i32, %c0_i32_0 : i32, i32
  }
  func.func @transform_6(%arg0: i32, %arg1: i32) -> (i32, i32) {
    %c0_i32 = arith.constant 0 : i32
    %c0_i32_0 = arith.constant 0 : i32
    %c0_i32_1 = arith.constant 0 : i32
    return %c0_i32, %c0_i32_0 : i32, i32
  }
  func.func @transform_7(%arg0: i32, %arg1: i32) -> (i32, i32) {
    %c0_i32 = arith.constant 0 : i32
    %c0_i32_0 = arith.constant 0 : i32
    %c0_i32_1 = arith.constant 0 : i32
    return %c0_i32, %c0_i32_0 : i32, i32
  }
  func.func @transform_8(%arg0: i32, %arg1: i32) -> (i32, i32) {
    %c0_i32 = arith.constant 0 : i32
    %c0_i32_0 = arith.constant 0 : i32
    %c0_i32_1 = arith.constant 0 : i32
    return %c0_i32, %c0_i32_0 : i32, i32
  }
  func.func @transform_9(%arg0: i32, %arg1: i32) -> (i32, i32) {
    %c0_i32 = arith.constant 0 : i32
    %c0_i32_0 = arith.constant 0 : i32
    %c0_i32_1 = arith.constant 0 : i32
    return %c0_i32, %c0_i32_0 : i32, i32
  }
  func.func @transform_10(%arg0: i32, %arg1: i32) -> (i32, i32) {
    %c0_i32 = arith.constant 0 : i32
    %c0_i32_0 = arith.constant 0 : i32
    %c0_i32_1 = arith.constant 0 : i32
    return %c0_i32, %c0_i32_0 : i32, i32
  }
  func.func @transform_11(%arg0: i32, %arg1: i32) -> (i32, i32) {
    %c0_i32 = arith.constant 0 : i32
    %c0_i32_0 = arith.constant 0 : i32
    %c0_i32_1 = arith.constant 0 : i32
    return %c0_i32, %c0_i32_0 : i32, i32
  }
  func.func @transform_12(%arg0: i32, %arg1: i32) -> (i32, i32) {
    %c0_i32 = arith.constant 0 : i32
    %c0_i32_0 = arith.constant 0 : i32
    %c0_i32_1 = arith.constant 0 : i32
    return %c0_i32, %c0_i32_0 : i32, i32
  }
  func.func @transform_13(%arg0: i32, %arg1: i32) -> (i32, i32, i32) {
    %c0_i32 = arith.constant 0 : i32
    %c0_i32_0 = arith.constant 0 : i32
    return %arg0, %arg1, %c0_i32 : i32, i32, i32
  }
}

</mosaic_0001>

<bundles_post_ra>
// kernel: tpu_custom_call.1
= control target key start
LH: loop header
LB: loop body
LE: loop exit
PB: predicated region body
PF: predicated region fallthrough
CT: control target
= control target key end

     0   :  { %s1697_s0 = inlined_call_operand.hbm [shape: bf16[2,8,32], index: 0, kind: input, shape index: {}]   ;;  %s1698_s1 = inlined_call_operand.vmem [shape: bf16[32,96], index: 1, kind: input, shape index: {}]   ;;  %s1699_s2 = inlined_call_operand.vmem [shape: f32[1,96], index: 2, kind: input, shape index: {}]   ;;  %s1700_s3 = inlined_call_operand.vmem [shape: bf16[32,32], index: 3, kind: input, shape index: {}]   ;;  %s1701_s4 = inlined_call_operand.vmem [shape: f32[1,32], index: 4, kind: input, shape index: {}]   ;;  %s1702_s5 = inlined_call_operand.vmem [shape: f32[1,32], index: 5, kind: input, shape index: {}]   ;;  %s1703_s6 = inlined_call_operand.vmem [shape: f32[1,32], index: 6, kind: input, shape index: {}]   ;;  %s1704_s7 = inlined_call_operand.vmem [shape: bf16[32,64], index: 7, kind: input, shape index: {}]   ;;  %s1705_s8 = inlined_call_operand.vmem [shape: f32[1,64], index: 8, kind: input, shape index: {}]   ;;  %s1706_s9 = inlined_call_operand.vmem [shape: bf16[64,32], index: 9, kind: input, shape index: {}]   ;;  %s1707_s10 = inlined_call_operand.vmem [shape: f32[1,32], index: 10, kind: input, shape index: {}]   ;;  %s1708_s11 = inlined_call_operand.vmem [shape: f32[1,32], index: 11, kind: input, shape index: {}]   ;;  %s1709_s12 = inlined_call_operand.vmem [shape: f32[1,32], index: 12, kind: input, shape index: {}]   ;;  %s1710_s13 = inlined_call_operand.hbm [shape: f32[2,8,32], index: 13, kind: output, shape index: {}]  }
   0x1   :  { %1716 = sst [smem:[#allocation11_spill]] %s1697_s0 }
   0x2   :  { %1717 = sst [smem:[#allocation12_spill]] %s1698_s1 }
   0x3   :  { %1718 = sst [smem:[#allocation13_spill]] %s1699_s2 }
   0x4   :  { %1719 = sst [smem:[#allocation14_spill]] %s1708_s11 }
   0x5   :  { %1720 = sst [smem:[#allocation15_spill]] %s1709_s12 }
   0x6   :  { %1721 = sst [smem:[#allocation16_spill]] %s1710_s13 }
   0x7   :  { %18 = vsyncpa [#allocation3], 0 }
   0x8   :  { %20 = vsyncpa [#allocation3 + $0x1], 0 }
   0x9   :  { %21 = vsyncpa [#allocation4], 0 }
   0xa   :  { %23 = vsyncpa [#allocation4 + $0x1], 0  ;;  %s1469_s25 = smov 0   ;;  %s1471_s26 = smov 0  }
   0xb   :  { %s1473_s27 = smov 0   ;;  %s1475_s28 = smov 0  }
   0xc   :  { %s1477_s29 = smov 0   ;;  %s1479_s30 = smov 0  }
   0xd LB: > { %1722 = sst [smem:[#allocation8_spill]] %s1368_s25  ;;  %s1100_s14 = sadd.s32 4294967295, %s1388_s30   ;;  %s1388_s30 = sphi %s1479_s30, %s29_s30   ;;  %s1384_s29 = sphi %s1477_s29, %s1742_s29   ;;  %s1380_s28 = sphi %s1475_s28, %s1741_s28   ;;  %s1376_s27 = sphi %s1473_s27, %s1740_s27   ;;  %s1372_s26 = sphi %s1471_s26, %s1739_s26   ;;  %s1368_s25 = sphi %s1469_s25, %s1738_s25  }
   0xe   : > { %s1101_s15 = sadd.s32 4294967294, %s1388_s30   ;;  %s41_s16 = sadd.s32 1, %s1384_s29 }
   0xf   : > { %s50_s17 = sadd.s32 1, %s1376_s27  ;;  %p43_p0 = scmp.ge.s32.totalorder %s41_s16, 2 }
  0x10   : > { %p57_p1 = scmp.ne.s32.totalorder %s1376_s27, %s1372_s26  ;;  %p58_p2 = scmp.eq.s32.totalorder %s1388_s30, 0 }
  0x11   : > { %p63_p3 = scmp.ne.s32.totalorder %s1372_s26, %s1368_s25  ;;  %s1744_s16 = smov (%p43_p0, %s41_s16), 0 }
  0x12   : > { %1723 = sst [smem:[#allocation9_spill]] %s1744_s16  ;;  %p1510_p4 = por %p58_p2, %p57_p1 }
  0x13   : > { %p64_p5 = scmp.eq.s32.totalorder %s1100_s14, 0  ;;  %s45_s19 = ssub.s32 %s1384_s29, %s1744_s16 }
  0x14   : > { %p341_p6 = scmp.eq.s32.totalorder %s1100_s14, 1  ;;  %p48_p7 = scmp.eq.s32.totalorder %s45_s19, 0 }
  0x15   : > { %p1516_p8 = por %p64_p5, %p63_p3  ;;  %p347_p10 = scmp.eq.s32.totalorder %s1101_s15, 1 }
  0x16   : > { %p1520_p9 = por %p341_p6, %p57_p1  ;;  %p1103_p12 = scmp.ge.s32.totalorder %s1388_s30, 2 }
  0x17   : > { %s1525_s22 = scalar_select %p48_p7, %s1376_s27, %s50_s17  }
  0x18   : > { %s1726_s21 = scalar_select %p1520_p9, 1, 0 }
  0x19   : > { %p1527_p11 = por %p347_p10, %p63_p3  ;;  %p1187_p13 = scmp.lt.s32.totalorder %s1388_s30, 2 }
  0x1a   : > { %1727 = sst [smem:[#allocation10_spill]] %s1726_s21  ;;  %s403_s24 = sand.u32 1, %s1376_s27  }
  0x1b   : > { %s1104_s14 = sshll.u32 %s403_s24, 2  ;;  %s1105_s19 = sshll.u32 %s1384_s29, 2 }
  0x1c   : > { %s1729_s0 = sld [smem:[#allocation11_spill]]  ;;  %s407_s13 = scalar_lea.vmem [#allocation2], %s1104_s14 }
  0x1d   : > { %s416_s21 = sshll.u32 %s407_s13, 4  ;;  %p1180_p0 = pnand %p1187_p13, %p1510_p4  ;;  %s417_s21 = int_to_ptr.vmem [resolvable:$true] %s416_s21 }
  0x1e   : > { %p1106_p1 = scmp.ge.s32.totalorder %s1388_s30, 1  ;;  %p421_p2 = scmp.lt.s32.totalorder %s1388_s30, 3 }
  0x1f   : > { %s404_s15 = scalar_lea.sflag [#allocation3], %s403_s24 }
  0x20   : > { %p422_p3 = pnand %p1106_p1, %p421_p2 }
  0x21   : > { %s1543_s17 = sand.u32 (!%p422_p3), 1, %s1372_s26  }
  0x22   : > { %s412_s12 = scalar_lea.hbm %s1729_s0, %s1105_s19  ;;  %425 = sbr.rel (%p422_p3) target bundleno = 2018 (0x7e2), region = 72 }
  0x23   : > { %s414_s11 = sshll.u32 %s412_s12, 4  ;;  %s1107_s25 = sshll.u32 (!%p422_p3), %s1543_s17, 2  ;;  %s415_s11 = int_to_ptr.hbm [resolvable:$true] %s414_s11 }
  0x24   : > { %1182 = dma.hbm_to_vmem [thread:$0]  (!%p1180_p0), %s415_s11, 64, %s417_s21, %s404_s15  }
  0x25   : > { %s428_s16 = scalar_lea.sflag (!%p422_p3), [#allocation3], %s1543_s17  ;;  %s431_s13 = scalar_lea.vmem (!%p422_p3), [#allocation2], %s1107_s25 }
  0x27   : > { %1359 = dma.done.wait (%p1516_p8), %s428_s16, 64  }
  0x28   : > { %1361 = vsyncadd (%p1516_p8), %s428_s16, 4294967232  ;;  %s1730_s1 = sld [smem:[#allocation12_spill]]  ;;  %v1557_v2 = vld [vmem:[%s431_s13] sm:$0xf]  ;;  %vm497_vm0 = vcmask 261120   ;;  %s1390_s20 = smov 104  }
  0x29   : > { %s1731_s2 = sld [smem:[#allocation13_spill]]  ;;  %s1391_s19 = smov 120   ;;  %vm534_vm1 = vcmask 64512   ;;  %vm703_vm2 = vcmask 1043456   ;;  %vm796_vm3 = vcmask 130048   ;;  %vm798_vm4 = vcmask 195584  }
  0x2a   : > { %s1392_s15 = smov 112   ;;  %s1393_s25 = smov 96   ;;  %vm952_vm9 = vcmask 523264  }
  0x2b   : > { %s1394_s16 = smov 64   ;;  %s1395_s13 = smov 16  }
  0x2c   : > { %s1396_s12 = smov 8   ;;  %s1397_s18 = smov 24  }
  0x2d   : > { %s1108_s24 = sshll.u32 %s1543_s17, 3  ;;  %s1162_s14 = sshll.u32 %s1380_s28, 3 }
  0x2e   : > { %v1166_v0 = vld [vmem:[%s1730_s1 + $0x8] sm:$0xff]  ;;  %v1165_v1 = vld [vmem:[%s1730_s1] sm:$0xff]  ;;  %s1735_s0 = sld [smem:[#allocation15_spill]]  ;;  %s474_s28 = scalar_lea.vmem [#allocation5], %s1108_s24 }
  0x2f   : > { %507 = vmatpush.bf16.msra.mxu0 %v1166_v0  ;;  %v1246_v3 = vld [vmem:[%s1731_s2] ss:$0 sm:$0xff]  ;;  %s1017_s1 = sshll.u32 %s474_s28, 4  ;;  %s1018_s1 = int_to_ptr.vmem [resolvable:$true] %s1017_s1 }
  0x33   : > { %508 = vmatpush.bf16.msra.mxu0 %v1165_v1 }
  0x36   : > { %1117 = vmatmul.msk.bf16.vlgmr.msra.gmra.mxu0 %vm497_vm0, %v1557_v2 }
  0xb3   : > { %v510_v4 = vpop.f32.mrf.mxu0 }
  0xb4   : > { %v511_v5 = vadd.f32 %v1246_v3, %v510_v4 }
  0xb6   : > { %521 = vrot.lane.b32.xlu1 %v511_v5, %s1390_s20  ;;  %515 = vrot.lane.b32.xlu0 %v511_v5, %s1391_s19  ;;  %v524_v7 = vpack.c.bf16 %v511_v5, %v511_v5  ;;  %s1004_s20 = scalar_lea.sflag [#allocation4], %s1543_s17 }
  0xb8   : > { %v530_v8 = vunpack.c.l.b16 %v524_v7 }
  0xba   : > { %v1564_v9 = vpack.c.b16 %v530_v8, %v530_v8 }
  0xbb   : > { %v512_v6 = vpop.f32.mrf.mxu0 }
  0xbe   : > { %518 = vrot.lane.b32.xlu0 %v511_v5, %s1392_s15  ;;  %s1732_s15 = sld [smem:[#allocation14_spill]] }
  0xc6   : > { %532 = vrot.lane.b32.xlu0 %v1564_v9, %s1393_s25 }
 0x128   : > { %v516_v10 = vpop.permute.xlu0 %515  ;;  %v522_v16 = vpop.permute.xlu1 %521 }
 0x129   : > { %v525_v11 = vpack.c.bf16 %v516_v10, %v516_v10  ;;  %v527_v18 = vpack.c.bf16 %v522_v16, %v522_v16 }
 0x12b   : > { %v555_v12 = vunpack.c.l.b16 %v525_v11  ;;  %v603_v21 = vunpack.c.l.b16 %v527_v18 }
 0x12d   : > { %v1567_v13 = vpack.c.b16 %v555_v12, %v555_v12  ;;  %v1574_v23 = vpack.c.b16 %v603_v21, %v603_v21 }
 0x12f   : > { %557 = vrot.lane.b32.xlu1 %v1567_v13, %s1393_s25 }
 0x130   : > { %v519_v14 = vpop.permute.xlu0 %518 }
 0x131   : > { %v526_v15 = vpack.c.bf16 %v519_v14, %v519_v14 }
 0x133   : > { %v579_v17 = vunpack.c.l.b16 %v526_v15 }
 0x135   : > { %v1570_v19 = vpack.c.b16 %v579_v17, %v579_v17 }
 0x137   : > { %581 = vrot.lane.b32.xlu2 %v1570_v19, %s1393_s25 }
 0x138   : > { %v533_v20 = vpop.permute.xlu0 %532 }
 0x139   : > { %v539_v22 = vsel %vm534_vm1, %v533_v20, 0 }
 0x13a   : > { %548 = vmatpush.bf16.xpose.msra.mxu1 %v539_v22 }
 0x13f   : > { %605 = vrot.lane.b32.xlu2 %v1574_v23, %s1393_s25 }
 0x141   : > { %1118 = vmatmul.msk.bf16.vlgmr.msra.gmra.mxu1 %vm534_vm1, %v524_v7 }
 0x191   : > { %v582_v24 = vpop.permute.xlu2 %581 }
 0x192   : > { %v587_v25 = vsel %vm534_vm1, %v582_v24, 0 }
 0x193   : > { %596 = vmatpush.bf16.xpose.msra.mxu3 %v587_v25 }
 0x199   : > { %v606_v26 = vpop.permute.xlu2 %605 }
 0x19a   : > { %1120 = vmatmul.msk.bf16.vlgmr.msra.gmra.mxu3 %vm534_vm1, %v526_v15  ;;  %v611_v27 = vsel %vm534_vm1, %v606_v26, 0 }
 0x19b   : > { %620 = vmatpush.bf16.xpose.msrb.mxu0 %v611_v27 }
 0x1a1   : > { %v558_v28 = vpop.permute.xlu1 %557 }
 0x1a2   : > { %1121 = vmatmul.msk.bf16.vlgmr.msrb.gmra.mxu0 %vm534_vm1, %v527_v18  ;;  %v563_v29 = vsel %vm534_vm1, %v558_v28, 0 }
 0x1a3   : > { %572 = vmatpush.bf16.xpose.msra.mxu2 %v563_v29 }
 0x1aa   : > { %1119 = vmatmul.msk.bf16.vlgmr.msra.gmra.mxu2 %vm534_vm1, %v525_v11 }
 0x1be   : > { %v550_v30 = vpop.f32.mrf.mxu1 }
 0x1bf   : > { %v626_v37 = vsel %vm534_vm1, %v550_v30, -inf }
 0x1c6   : > { %v552_v31 = vpop.f32.mrf.mxu1 }
 0x21d   : > { %v598_v32 = vpop.f32.mrf.mxu3 }
 0x21e   : > { %v632_v33 = vsel %vm534_vm1, %v598_v32, -inf }
 0x21f   : > { %633 = vmax.xlane.f32.xlu2 %v632_v33  ;;  %v622_v34 = vpop.f32.mrf.mxu0 }
 0x220   : > { %v635_v35 = vsel %vm534_vm1, %v622_v34, -inf }
 0x221   : > { %636 = vmax.xlane.f32.xlu0 %v635_v35 }
 0x225   : > { %v600_v36 = vpop.f32.mrf.mxu3 }
 0x227   : > { %v624_v38 = vpop.f32.mrf.mxu0  ;;  %627 = vmax.xlane.f32.xlu2 %v626_v37 }
 0x22d   : > { %v574_v39 = vpop.f32.mrf.mxu2 }
 0x22e   : > { %v629_v40 = vsel %vm534_vm1, %v574_v39, -inf }
 0x22f   : > { %630 = vmax.xlane.f32.xlu1 %v629_v40 }
 0x235   : > { %v576_v41 = vpop.f32.mrf.mxu2 }
 0x292   : > { %v634_v42 = vpop.xlane.xlu2 %633 }
 0x293   : > { %v640_v43 = vsub.f32 %v598_v32, %v634_v42 }
 0x294   : > { %v637_v44 = vpop.xlane.xlu0 %636 }
 0x295   : > { %v644_v45 = vpack.c.bf16 %v640_v43, %v640_v43  ;;  %v641_v46 = vsub.f32 %v622_v34, %v637_v44 }
 0x297   : > { %v648_v47 = vunpack.c.l.bf16 %v644_v45  ;;  %v645_v48 = vpack.c.bf16 %v641_v46, %v641_v46 }
 0x299   : > { %v654_v49 = vmul.f32 1.442695, %v648_v47  ;;  %v649_v50 = vunpack.c.l.bf16 %v645_v48 }
 0x29a   : > { %v628_v6 = vpop.xlane.xlu2 %627 }
 0x29b   : > { %1254 = vpow2.f32 %v654_v49  ;;  %v656_v51 = vmul.f32 1.442695, %v649_v50  ;;  %v638_v7 = vsub.f32 %v550_v30, %v628_v6 }
 0x29d   : > { %1256 = vpow2.f32 %v656_v51  ;;  %v642_v8 = vpack.c.bf16 %v638_v7, %v638_v7 }
 0x29f   : > { %v646_v10 = vunpack.c.l.bf16 %v642_v8  ;;  %v1398_v8 = vmov 32.0  }
 0x2a1   : > { %v1255_v52 = vpop.eup %1254  ;;  %v650_v11 = vmul.f32 1.442695, %v646_v10 }
 0x2a2   : > { %v631_v53 = vpop.xlane.xlu1 %630  ;;  %v660_v54 = vpack.c.bf16 %v1255_v52, %v1255_v52 }
 0x2a3   : > { %v1257_v55 = vpop.eup %1256  ;;  %v639_v56 = vsub.f32 %v574_v39, %v631_v53 }
 0x2a4   : > { %v664_v57 = vunpack.c.l.bf16 %v660_v54  ;;  %v661_v58 = vpack.c.bf16 %v1257_v55, %v1257_v55  ;;  %v1168_v55 = vld [vmem:[%s1700_s3 + $0x8] sm:$0xff] }
 0x2a5   : > { %v643_v59 = vpack.c.bf16 %v639_v56, %v639_v56  ;;  %v1167_v56 = vld [vmem:[%s1700_s3] sm:$0xff] }
 0x2a6   : > { %v672_v60 = vsel %vm534_vm1, %v664_v57, 0.0  ;;  %v665_v61 = vunpack.c.l.bf16 %v661_v58 }
 0x2a7   : > { %v647_v62 = vunpack.c.l.bf16 %v643_v59  ;;  %673 = vadd.xlane.f32.xlu2 %v672_v60 }
 0x2a8   : > { %v675_v63 = vsel %vm534_vm1, %v665_v61, 0.0 }
 0x2a9   : > { %v652_v0 = vmul.f32 1.442695, %v647_v62  ;;  %676 = vadd.xlane.f32.xlu0 %v675_v63 }
 0x2ab   : > { %1258 = vpow2.f32 %v652_v0  ;;  %v1247_v0 = vld [vmem:[%s1701_s4] ss:$0 sm:$0xff] }
 0x2ac   : > { %1260 = vpow2.f32 %v650_v11 }
 0x2b1   : > { %v1259_v1 = vpop.eup %1258 }
 0x2b2   : > { %v659_v3 = vpack.c.bf16 %v1259_v1, %v1259_v1  ;;  %v1261_v12 = vpop.eup %1260  ;;  %v528_v1 = vunpack.c.l.bf16 %v1557_v2 }
 0x2b3   : > { %v658_v14 = vpack.c.bf16 %v1261_v12, %v1261_v12 }
 0x2b4   : > { %v663_v4 = vunpack.c.l.bf16 %v659_v3 }
 0x2b5   : > { %v662_v15 = vunpack.c.l.bf16 %v658_v14 }
 0x2b6   : > { %v669_v5 = vsel %vm534_vm1, %v663_v4, 0.0 }
 0x2b7   : > { %670 = vadd.xlane.f32.xlu1 %v669_v5  ;;  %v666_v16 = vsel %vm534_vm1, %v662_v15, 0.0 }
 0x2bd   : > { %762 = vrot.lane.b32.xlu0 %v1574_v23, %s1394_s16 }
 0x2bf   : > { %741 = vrot.lane.b32.xlu2 %v1570_v19, %s1394_s16 }
 0x2c5   : > { %698 = vrot.lane.b32.xlu0 %v1564_v9, %s1394_s16 }
 0x2d0   : > { %720 = vrot.lane.b32.xlu1 %v1567_v13, %s1394_s16 }
 0x2fa   : > { %667 = vadd.xlane.f32.xlu1 %v666_v16 }
 0x31a   : > { %v674_v17 = vpop.xlane.xlu2 %673 }
 0x31b   : > { %1262 = vrcp.f32 %v674_v17 }
 0x31c   : > { %v677_v18 = vpop.xlane.xlu0 %676 }
 0x31d   : > { %1264 = vrcp.f32 %v677_v18 }
 0x321   : > { %v1263_v9 = vpop.eup %1262 }
 0x322   : > { %v684_v19 = vpack.c.bf16 %v1263_v9, %v1263_v9  ;;  %v742_v13 = vpop.permute.xlu2 %741 }
 0x323   : > { %v1265_v20 = vpop.eup %1264  ;;  %v747_v21 = vsel %vm703_vm2, %v742_v13, 0  ;;  %v1170_v13 = vld [vmem:[%s1704_s7 + $0x8] sm:$0xff] }
 0x324   : > { %v688_v22 = vunpack.c.l.bf16 %v684_v19  ;;  %756 = vmatpush.bf16.msrb.mxu3 %v747_v21  ;;  %v685_v24 = vpack.c.bf16 %v1265_v20, %v1265_v20  ;;  %v1169_v20 = vld [vmem:[%s1704_s7] sm:$0xff]  ;;  %v1174_v21 = vld [vmem:[%s1706_s9 + $0x18] sm:$0xff] }
 0x326   : > { %v692_v23 = vmul.f32 %v688_v22, %v664_v57  ;;  %v689_v26 = vunpack.c.l.bf16 %v685_v24  ;;  %v1173_v24 = vld [vmem:[%s1706_s9 + $0x10] sm:$0xff] }
 0x328   : > { %v696_v25 = vpack.c.bf16 %v692_v23, %v692_v23  ;;  %v693_v28 = vmul.f32 %v689_v26, %v665_v61  ;;  %960 = vmatpush.bf16.msra.mxu3 %v1174_v21 }
 0x32a   : > { %1124 = vmatmul.msk.bf16.vlgmr.msrb.gmra.mxu3 %vm534_vm1, %v696_v25  ;;  %v671_v27 = vpop.xlane.xlu1 %670  ;;  %v697_v31 = vpack.c.bf16 %v693_v28, %v693_v28 }
 0x32b   : > { %1266 = vrcp.f32 %v671_v27 }
 0x32c   : > { %961 = vmatpush.bf16.msra.mxu3 %v1173_v24 }
 0x32f   : > { %v763_v29 = vpop.permute.xlu0 %762 }
 0x330   : > { %v768_v30 = vsel %vm703_vm2, %v763_v29, 0 }
 0x331   : > { %777 = vmatpush.bf16.msra.mxu0 %v768_v30  ;;  %v1267_v32 = vpop.eup %1266 }
 0x332   : > { %v683_v35 = vpack.c.bf16 %v1267_v32, %v1267_v32  ;;  %v1248_v32 = vld [vmem:[%s1702_s5] ss:$0 sm:$0xff] }
 0x334   : > { %1125 = vmatmul.msk.bf16.vlgmr.msra.gmra.mxu0 %vm534_vm1, %v697_v31  ;;  %v687_v36 = vunpack.c.l.bf16 %v683_v35 }
 0x336   : > { %v691_v37 = vmul.f32 %v687_v36, %v663_v4 }
 0x337   : > { %v699_v33 = vpop.permute.xlu0 %698 }
 0x338   : > { %v705_v34 = vsel %vm703_vm2, %v699_v33, 0  ;;  %v695_v40 = vpack.c.bf16 %v691_v37, %v691_v37 }
 0x339   : > { %714 = vmatpush.bf16.msrb.mxu1 %v705_v34  ;;  %v1249_v34 = vld [vmem:[%s1703_s6] ss:$0 sm:$0xff] }
 0x33d   : > { %830 = vmatpush.bf16.msra.mxu1 %v1168_v55 }
 0x341   : > { %831 = vmatpush.bf16.msra.mxu1 %v1167_v56 }
 0x342   : > { %v721_v38 = vpop.permute.xlu1 %720 }
 0x343   : > { %v726_v39 = vsel %vm703_vm2, %v721_v38, 0 }
 0x344   : > { %735 = vmatpush.bf16.msrb.mxu2 %v726_v39  ;;  %v1172_v39 = vld [vmem:[%s1706_s9 + $0x8] sm:$0xff] }
 0x345   : > { %962 = vmatpush.bf16.msra.mxu3 %v1172_v39 }
 0x347   : > { %1123 = vmatmul.msk.bf16.vlgmr.msrb.gmra.mxu2 %vm534_vm1, %v695_v40  ;;  %v1171_v40 = vld [vmem:[%s1706_s9] sm:$0xff] }
 0x348   : > { %907 = vmatpush.bf16.msra.mxu2 %v1170_v13 }
 0x349   : > { %963 = vmatpush.bf16.msra.mxu3 %v1171_v40 }
 0x34c   : > { %908 = vmatpush.bf16.msra.mxu2 %v1169_v20 }
 0x36d   : > { %v668_v41 = vpop.xlane.xlu1 %667 }
 0x36e   : > { %1268 = vrcp.f32 %v668_v41  ;;  %v1250_v41 = vld [vmem:[%s1705_s8] ss:$0 sm:$0xff] }
 0x36f   : > { %1270 = vrcp.f32 %v1398_v8 }
 0x374   : > { %v1269_v42 = vpop.eup %1268 }
 0x375   : > { %v682_v43 = vpack.c.bf16 %v1269_v42, %v1269_v42  ;;  %v1271_v10 = vpop.eup %1270 }
 0x376   : > { %v844_v11 = vmul.f32 32.0, %v1271_v10  ;;  %vm848_vm5 = vweird.f32 %v1271_v10 }
 0x377   : > { %v686_v44 = vunpack.c.l.bf16 %v682_v43 }
 0x378   : > { %v845_v12 = vsub.f32 1.0, %v844_v11 }
 0x379   : > { %v690_v45 = vmul.f32 %v686_v44, %v662_v15 }
 0x37a   : > { %v846_v14 = vmul.f32 %v1271_v10, %v845_v12 }
 0x37b   : > { %v694_v46 = vpack.c.bf16 %v690_v45, %v690_v45 }
 0x37c   : > { %v847_v15 = vadd.f32 %v1271_v10, %v846_v14 }
 0x37d   : > { %1122 = vmatmul.msk.bf16.vlgmr.msrb.gmra.mxu1 %vm534_vm1, %v694_v46 }
 0x37e   : > { %v849_v16 = vsel %vm848_vm5, %v1271_v10, %v847_v15 }
 0x3ad   : > { %v758_v47 = vpop.f32.mrf.mxu3 }
 0x3ae   : > { %788 = vrot.lane.b32.xlu0 %v758_v47, %s1395_s13  ;;  %v1251_v47 = vld [vmem:[%s1707_s10] ss:$0 sm:$0xff]  ;;  %s1733_s13 = sld [smem:[#allocation16_spill]] }
 0x3b1   : > { %v779_v48 = vpop.f32.mrf.mxu0 }
 0x3b5   : > { %v760_v49 = vpop.f32.mrf.mxu3 }
 0x3b9   : > { %v781_v50 = vpop.f32.mrf.mxu0 }
 0x3ca   : > { %v737_v51 = vpop.f32.mrf.mxu2 }
 0x3cb   : > { %784 = vrot.lane.b32.xlu2 %v737_v51, %s1396_s12  ;;  %s1015_s12 = scalar_lea.hbm %s1733_s13, %s1162_s14 }
 0x3cc   : > { %s1019_s2 = sshll.u32 %s1015_s12, 4  ;;  %s1020_s2 = int_to_ptr.hbm [resolvable:$true] %s1019_s2 }
 0x3cd   : > { %s1320_s19 = sshra.s32 %s1020_s2, 4  ;;  %s1321_s19 = int_to_ptr.hbm [resolvable:$true] %s1320_s19 }
 0x3ce   : > { %s1322_s14 = scalar_lea.hbm %s1321_s19, 8  ;;  %p1327_p7 = scmp.lt.s32.totalorder %s1321_s19, %s1733_s13 }
 0x3cf   : > { %p1323_p4 = scmp.ne.s32.totalorder %s1321_s19, %s1322_s14 }
 0x3d1   : > { %p1324_p5 = pnand %p1323_p4, %p1520_p9 }
 0x3d2   : > { %v739_v52 = vpop.f32.mrf.mxu2 }
 0x3d3   : > { %792 = vrot.lane.b32.xlu2 %v779_v48, %s1397_s18  ;;  %p1325_p6 = pneg %p1324_p5 }
 0x3fa   : > { %v716_v53 = vpop.f32.mrf.mxu1 }
 0x402   : > { %v718_v54 = vpop.f32.mrf.mxu1 }
 0x420   : > { %v789_v59 = vpop.permute.xlu0 %788 }
 0x425   : > { %v785_v57 = vpop.permute.xlu2 %784 }
 0x426   : > { %v795_v58 = vsel %vm534_vm1, %v716_v53, %v785_v57 }
 0x427   : > { %v797_v61 = vsel %vm796_vm3, %v795_v58, %v789_v59 }
 0x42d   : > { %v793_v60 = vpop.permute.xlu2 %792 }
 0x42e   : > { %v799_v62 = vsel %vm798_vm4, %v797_v61, %v793_v60 }
 0x42f   : > { %v800_v63 = vpack.c.bf16 %v799_v62, %v799_v62 }
 0x431   : > { %1134 = vmatmul.msk.bf16.vlgmr.msra.gmra.mxu1 %vm497_vm0, %v800_v63 }
 0x4ae   : > { %v833_v3 = vpop.f32.mrf.mxu1 }
 0x4af   : > { %v834_v4 = vadd.f32 %v1247_v0, %v833_v3 }
 0x4b1   : > { %v837_v5 = vadd.f32 %v834_v4, %v528_v1  ;;  %v1252_v4 = vld [vmem:[%s1732_s15] ss:$0 sm:$0xff] }
 0x4b3   : > { %v840_v6 = vsel %vm497_vm0, %v837_v5, 0.0 }
 0x4b4   : > { %841 = vadd.xlane.f32.xlu0 %v840_v6 }
 0x4b6   : > { %v835_v7 = vpop.f32.mrf.mxu1 }
 0x4b7   : > { %v1253_v7 = vld [vmem:[%s1735_s0] ss:$0 sm:$0xff]  ;;  %s1326_s0 = scalar_lea.hbm %s1733_s13, 16 }
 0x4b8   : > { %p1328_p8 = scmp.lt.s32.totalorder %s1326_s0, %s1322_s14 }
 0x4ba   : > { %p1329_p10 = por %p1328_p8, %p1327_p7 }
 0x4bc   : > { %p1330_p13 = pnand %p1329_p10, %p1325_p6 }
 0x527   : > { %v842_v17 = vpop.xlane.xlu0 %841 }
 0x528   : > { %v850_v18 = vmul.f32 %v849_v16, %v842_v17 }
 0x52a   : > { %v851_v9 = vsub.f32 %v837_v5, %v850_v18 }
 0x52c   : > { %v852_v2 = vmul.f32 %v851_v9, %v851_v9 }
 0x52e   : > { %v853_v19 = vsel %vm497_vm0, %v852_v2, 0.0 }
 0x52f   : > { %854 = vadd.xlane.f32.xlu2 %v853_v19 }
 0x5a2   : > { %v855_v22 = vpop.xlane.xlu2 %854 }
 0x5a3   : > { %v856_v23 = vmul.f32 %v855_v22, %v849_v16 }
 0x5a5   : > { %v857_v25 = vadd.f32 1e-05, %v856_v23 }
 0x5a7   : > { %1272 = vrsqrt.f32 %v857_v25  ;;  %vm864_vm7 = vweird.f32 %v857_v25 }
 0x5ad   : > { %v1273_v26 = vpop.eup %1272 }
 0x5ae   : > { %v859_v27 = vmul.f32 %v1273_v26, %v857_v25  ;;  %vm865_vm6 = vweird.f32 %v1273_v26 }
 0x5af   : > { %vm866_vm8 = vmor %vm864_vm7, %vm865_vm6 }
 0x5b0   : > { %v860_v28 = vmul.f32 %v1273_v26, %v859_v27 }
 0x5b2   : > { %v861_v29 = vmul.f32 0.5, %v860_v28 }
 0x5b4   : > { %v862_v30 = vsub.f32 1.5, %v861_v29 }
 0x5b6   : > { %v863_v31 = vmul.f32 %v1273_v26, %v862_v30 }
 0x5b8   : > { %v867_v33 = vsel %vm866_vm8, %v1273_v26, %v863_v31 }
 0x5b9   : > { %v868_v35 = vmul.f32 %v867_v33, %v851_v9 }
 0x5bb   : > { %v872_v36 = vmul.f32 %v1248_v32, %v868_v35 }
 0x5bd   : > { %v876_v37 = vadd.f32 %v1249_v34, %v872_v36 }
 0x5bf   : > { %v877_v38 = vpack.c.bf16 %v876_v37, %v876_v37 }
 0x5c1   : > { %1143 = vmatmul.msk.bf16.vlgmr.msra.gmra.mxu2 %vm497_vm0, %v877_v38 }
 0x644   : > { %v910_v42 = vpop.f32.mrf.mxu2 }
 0x645   : > { %v911_v43 = vadd.f32 %v1250_v41, %v910_v42 }
 0x647   : > { %v914_v44 = vmax.f32 %v911_v43, 0.0 }
 0x649   : > { %v915_v45 = vpack.c.bf16 %v914_v44, %v914_v44 }
 0x64b   : > { %1160 = vmatmul.msk.bf16.vlgmr.msra.gmra.mxu3 %vm952_vm9, %v915_v45 }
 0x64c   : > { %v912_v46 = vpop.f32.mrf.mxu2 }
 0x6ce   : > { %v965_v48 = vpop.f32.mrf.mxu3 }
 0x6cf   : > { %v966_v49 = vadd.f32 %v1251_v47, %v965_v48 }
 0x6d1   : > { %v969_v50 = vadd.f32 %v966_v49, %v876_v37 }
 0x6d3   : > { %v972_v51 = vsel %vm497_vm0, %v969_v50, 0.0 }
 0x6d4   : > { %973 = vadd.xlane.f32.xlu1 %v972_v51 }
 0x6d6   : > { %v967_v52 = vpop.f32.mrf.mxu3 }
 0x747   : > { %v974_v53 = vpop.xlane.xlu1 %973 }
 0x748   : > { %v975_v54 = vmul.f32 %v974_v53, %v849_v16 }
 0x74a   : > { %v976_v55 = vsub.f32 %v969_v50, %v975_v54 }
 0x74c   : > { %v977_v56 = vmul.f32 %v976_v55, %v976_v55 }
 0x74e   : > { %v978_v57 = vsel %vm497_vm0, %v977_v56, 0.0 }
 0x74f   : > { %979 = vadd.xlane.f32.xlu1 %v978_v57 }
 0x7c2   : > { %v980_v58 = vpop.xlane.xlu1 %979 }
 0x7c3   : > { %v981_v59 = vmul.f32 %v980_v58, %v849_v16 }
 0x7c5   : > { %v982_v60 = vadd.f32 1e-05, %v981_v59 }
 0x7c7   : > { %1274 = vrsqrt.f32 %v982_v60  ;;  %vm989_vm11 = vweird.f32 %v982_v60 }
 0x7cd   : > { %v1275_v61 = vpop.eup %1274 }
 0x7ce   : > { %v984_v62 = vmul.f32 %v1275_v61, %v982_v60  ;;  %vm990_vm10 = vweird.f32 %v1275_v61 }
 0x7cf   : > { %vm991_vm12 = vmor %vm989_vm11, %vm990_vm10 }
 0x7d0   : > { %v985_v63 = vmul.f32 %v1275_v61, %v984_v62 }
 0x7d2   : > { %v986_v0 = vmul.f32 0.5, %v985_v63 }
 0x7d4   : > { %v987_v1 = vsub.f32 1.5, %v986_v0 }
 0x7d6   : > { %v988_v3 = vmul.f32 %v1275_v61, %v987_v1 }
 0x7d8   : > { %v992_v5 = vsel %vm991_vm12, %v1275_v61, %v988_v3 }
 0x7d9   : > { %v993_v6 = vmul.f32 %v992_v5, %v976_v55 }
 0x7db   : > { %v997_v8 = vmul.f32 %v1252_v4, %v993_v6 }
 0x7dd   : > { %v1001_v10 = vadd.f32 %v1253_v7, %v997_v8 }
 0x7df   : > { %1002 = vst.msk [vmem:[%s474_s28] sm:$0xff] %vm497_vm0, %v1001_v10 }
 0x7e0   : > { %1333 = shalt.err (!%p1330_p13)
}
 0x7e1   : > { %1177 = dma.vmem_to_hbm [thread:$0]  (%p1520_p9), %s1018_s1, 128, %s1020_s2, %s1004_s20  }
 0x7e2 PF: > { %s1736_s17 = sld [smem:[#allocation8_spill]]  ;;  %p1184_p0 = pnand %p1103_p12, %p1527_p11 }
 0x7e4   : > { %p1185_p1 = pneg %p1184_p0 }
 0x7e8   : > { %s1031_s12 = sand.u32 1, %s1736_s17  }
 0x7e9   : > { %s1032_s11 = scalar_lea.sflag [#allocation4], %s1031_s12 }
 0x7ea   : > { %1363 = dma.done.wait (%p1185_p1), %s1032_s11, 128  }
 0x7eb   : > { %1365 = vsyncadd (%p1185_p1), %s1032_s11, 4294967168  ;;  %s29_s30 = sadd.s32 1, %s1388_s30   ;;  %s1737_s1 = sld [smem:[#allocation9_spill]] }
 0x7ec   : > { %p26_p2 = scmp.ge.s32.totalorder %s29_s30, 4   ;;  %s1738_s25 = smov %s1372_s26 }
 0x7ed   : > { %s1739_s26 = smov %s1376_s27  ;;  %s1740_s27 = smov %s1525_s22 }
 0x7ee   : > { %s1741_s28 = smov %s1384_s29  ;;  %28 = sbr.rel (!%p26_p2) target bundleno = 13 (0xd), region = 117 }
 0x7f1   : > { %s1742_s29 = smov %s1737_s1 }
 0x7f3   :  { %1038 = vsyncpa [#allocation3], 1 }
 0x7f4   :  { %1040 = vsyncpa [#allocation3 + $0x1], 1 }
 0x7f5   :  { %1041 = vsyncpa [#allocation4], 1 }
 0x7f6   :  { %1043 = vsyncpa [#allocation4 + $0x1], 1 }

// kernel: tpu_custom_call.1
= control target key start
LH: loop header
LB: loop body
LE: loop exit
PB: predicated region body
PF: predicated region fallthrough
CT: control target
= control target key end

     0   :  { %s1697_s0 = inlined_call_operand.hbm [shape: bf16[2,8,32], index: 0, kind: input, shape index: {}]   ;;  %s1698_s1 = inlined_call_operand.vmem [shape: bf16[32,96], index: 1, kind: input, shape index: {}]   ;;  %s1699_s2 = inlined_call_operand.vmem [shape: f32[1,96], index: 2, kind: input, shape index: {}]   ;;  %s1700_s3 = inlined_call_operand.vmem [shape: bf16[32,32], index: 3, kind: input, shape index: {}]   ;;  %s1701_s4 = inlined_call_operand.vmem [shape: f32[1,32], index: 4, kind: input, shape index: {}]   ;;  %s1702_s5 = inlined_call_operand.vmem [shape: f32[1,32], index: 5, kind: input, shape index: {}]   ;;  %s1703_s6 = inlined_call_operand.vmem [shape: f32[1,32], index: 6, kind: input, shape index: {}]   ;;  %s1704_s7 = inlined_call_operand.vmem [shape: bf16[32,64], index: 7, kind: input, shape index: {}]   ;;  %s1705_s8 = inlined_call_operand.vmem [shape: f32[1,64], index: 8, kind: input, shape index: {}]   ;;  %s1706_s9 = inlined_call_operand.vmem [shape: bf16[64,32], index: 9, kind: input, shape index: {}]   ;;  %s1707_s10 = inlined_call_operand.vmem [shape: f32[1,32], index: 10, kind: input, shape index: {}]   ;;  %s1708_s11 = inlined_call_operand.vmem [shape: f32[1,32], index: 11, kind: input, shape index: {}]   ;;  %s1709_s12 = inlined_call_operand.vmem [shape: f32[1,32], index: 12, kind: input, shape index: {}]   ;;  %s1710_s13 = inlined_call_operand.hbm [shape: f32[2,8,32], index: 13, kind: output, shape index: {}]  }
   0x1   :  { %1716 = sst [smem:[#allocation11_spill]] %s1697_s0 }
   0x2   :  { %1717 = sst [smem:[#allocation12_spill]] %s1698_s1 }
   0x3   :  { %1718 = sst [smem:[#allocation13_spill]] %s1699_s2 }
   0x4   :  { %1719 = sst [smem:[#allocation14_spill]] %s1708_s11 }
   0x5   :  { %1720 = sst [smem:[#allocation15_spill]] %s1709_s12 }
   0x6   :  { %1721 = sst [smem:[#allocation16_spill]] %s1710_s13 }
   0x7   :  { %18 = vsyncpa [#allocation3], 0 }
   0x8   :  { %20 = vsyncpa [#allocation3 + $0x1], 0 }
   0x9   :  { %21 = vsyncpa [#allocation4], 0 }
   0xa   :  { %23 = vsyncpa [#allocation4 + $0x1], 0  ;;  %s1469_s25 = smov 0   ;;  %s1471_s26 = smov 0  }
   0xb   :  { %s1473_s27 = smov 0   ;;  %s1475_s28 = smov 0  }
   0xc   :  { %s1477_s29 = smov 0   ;;  %s1479_s30 = smov 0  }
   0xd LB: > { %1722 = sst [smem:[#allocation8_spill]] %s1368_s25  ;;  %s1100_s14 = sadd.s32 4294967295, %s1388_s30   ;;  %s1388_s30 = sphi %s1479_s30, %s29_s30   ;;  %s1384_s29 = sphi %s1477_s29, %s1742_s29   ;;  %s1380_s28 = sphi %s1475_s28, %s1741_s28   ;;  %s1376_s27 = sphi %s1473_s27, %s1740_s27   ;;  %s1372_s26 = sphi %s1471_s26, %s1739_s26   ;;  %s1368_s25 = sphi %s1469_s25, %s1738_s25  }
   0xe   : > { %s1101_s15 = sadd.s32 4294967294, %s1388_s30   ;;  %s41_s16 = sadd.s32 1, %s1384_s29 }
   0xf   : > { %s50_s17 = sadd.s32 1, %s1376_s27  ;;  %p43_p0 = scmp.ge.s32.totalorder %s41_s16, 2 }
  0x10   : > { %p57_p1 = scmp.ne.s32.totalorder %s1376_s27, %s1372_s26  ;;  %p58_p2 = scmp.eq.s32.totalorder %s1388_s30, 0 }
  0x11   : > { %p63_p3 = scmp.ne.s32.totalorder %s1372_s26, %s1368_s25  ;;  %s1744_s16 = smov (%p43_p0, %s41_s16), 0 }
  0x12   : > { %1723 = sst [smem:[#allocation9_spill]] %s1744_s16  ;;  %p1510_p4 = por %p58_p2, %p57_p1 }
  0x13   : > { %p64_p5 = scmp.eq.s32.totalorder %s1100_s14, 0  ;;  %s45_s19 = ssub.s32 %s1384_s29, %s1744_s16 }
  0x14   : > { %p341_p6 = scmp.eq.s32.totalorder %s1100_s14, 1  ;;  %p48_p7 = scmp.eq.s32.totalorder %s45_s19, 0 }
  0x15   : > { %p1516_p8 = por %p64_p5, %p63_p3  ;;  %p347_p10 = scmp.eq.s32.totalorder %s1101_s15, 1 }
  0x16   : > { %p1520_p9 = por %p341_p6, %p57_p1  ;;  %p1103_p12 = scmp.ge.s32.totalorder %s1388_s30, 2 }
  0x17   : > { %s1525_s22 = scalar_select %p48_p7, %s1376_s27, %s50_s17  }
  0x18   : > { %s1726_s21 = scalar_select %p1520_p9, 1, 0 }
  0x19   : > { %p1527_p11 = por %p347_p10, %p63_p3  ;;  %p1187_p13 = scmp.lt.s32.totalorder %s1388_s30, 2 }
  0x1a   : > { %1727 = sst [smem:[#allocation10_spill]] %s1726_s21  ;;  %s403_s24 = sand.u32 1, %s1376_s27  }
  0x1b   : > { %s1104_s14 = sshll.u32 %s403_s24, 2  ;;  %s1105_s19 = sshll.u32 %s1384_s29, 2 }
  0x1c   : > { %s1729_s0 = sld [smem:[#allocation11_spill]]  ;;  %s407_s13 = scalar_lea.vmem [#allocation2], %s1104_s14 }
  0x1d   : > { %s416_s21 = sshll.u32 %s407_s13, 4  ;;  %p1180_p0 = pnand %p1187_p13, %p1510_p4  ;;  %s417_s21 = int_to_ptr.vmem [resolvable:$true] %s416_s21 }
  0x1e   : > { %p1106_p1 = scmp.ge.s32.totalorder %s1388_s30, 1  ;;  %p421_p2 = scmp.lt.s32.totalorder %s1388_s30, 3 }
  0x1f   : > { %s404_s15 = scalar_lea.sflag [#allocation3], %s403_s24 }
  0x20   : > { %p422_p3 = pnand %p1106_p1, %p421_p2 }
  0x21   : > { %s1543_s17 = sand.u32 (!%p422_p3), 1, %s1372_s26  }
  0x22   : > { %s412_s12 = scalar_lea.hbm %s1729_s0, %s1105_s19  ;;  %425 = sbr.rel (%p422_p3) target bundleno = 2018 (0x7e2), region = 72 }
  0x23   : > { %s414_s11 = sshll.u32 %s412_s12, 4  ;;  %s1107_s25 = sshll.u32 (!%p422_p3), %s1543_s17, 2  ;;  %s415_s11 = int_to_ptr.hbm [resolvable:$true] %s414_s11 }
  0x24   : > { %1182 = dma.hbm_to_vmem [thread:$0]  (!%p1180_p0), %s415_s11, 64, %s417_s21, %s404_s15  }
  0x25   : > { %s428_s16 = scalar_lea.sflag (!%p422_p3), [#allocation3], %s1543_s17  ;;  %s431_s13 = scalar_lea.vmem (!%p422_p3), [#allocation2], %s1107_s25 }
  0x27   : > { %1359 = dma.done.wait (%p1516_p8), %s428_s16, 64  }
  0x28   : > { %1361 = vsyncadd (%p1516_p8), %s428_s16, 4294967232  ;;  %s1730_s1 = sld [smem:[#allocation12_spill]]  ;;  %v1557_v2 = vld [vmem:[%s431_s13] sm:$0xf]  ;;  %vm497_vm0 = vcmask 261120   ;;  %s1390_s20 = smov 104  }
  0x29   : > { %s1731_s2 = sld [smem:[#allocation13_spill]]  ;;  %s1391_s19 = smov 120   ;;  %vm534_vm1 = vcmask 64512   ;;  %vm703_vm2 = vcmask 1043456   ;;  %vm796_vm3 = vcmask 130048   ;;  %vm798_vm4 = vcmask 195584  }
  0x2a   : > { %s1392_s15 = smov 112   ;;  %s1393_s25 = smov 96   ;;  %vm952_vm9 = vcmask 523264  }
  0x2b   : > { %s1394_s16 = smov 64   ;;  %s1395_s13 = smov 16  }
  0x2c   : > { %s1396_s12 = smov 8   ;;  %s1397_s18 = smov 24  }
  0x2d   : > { %s1108_s24 = sshll.u32 %s1543_s17, 3  ;;  %s1162_s14 = sshll.u32 %s1380_s28, 3 }
  0x2e   : > { %v1166_v0 = vld [vmem:[%s1730_s1 + $0x8] sm:$0xff]  ;;  %v1165_v1 = vld [vmem:[%s1730_s1] sm:$0xff]  ;;  %s1735_s0 = sld [smem:[#allocation15_spill]]  ;;  %s474_s28 = scalar_lea.vmem [#allocation5], %s1108_s24 }
  0x2f   : > { %507 = vmatpush.bf16.msra.mxu0 %v1166_v0  ;;  %v1246_v3 = vld [vmem:[%s1731_s2] ss:$0 sm:$0xff]  ;;  %s1017_s1 = sshll.u32 %s474_s28, 4  ;;  %s1018_s1 = int_to_ptr.vmem [resolvable:$true] %s1017_s1 }
  0x33   : > { %508 = vmatpush.bf16.msra.mxu0 %v1165_v1 }
  0x36   : > { %1117 = vmatmul.msk.bf16.vlgmr.msra.gmra.mxu0 %vm497_vm0, %v1557_v2 }
  0xb3   : > { %v510_v4 = vpop.f32.mrf.mxu0 }
  0xb4   : > { %v511_v5 = vadd.f32 %v1246_v3, %v510_v4 }
  0xb6   : > { %521 = vrot.lane.b32.xlu1 %v511_v5, %s1390_s20  ;;  %515 = vrot.lane.b32.xlu0 %v511_v5, %s1391_s19  ;;  %v524_v7 = vpack.c.bf16 %v511_v5, %v511_v5  ;;  %s1004_s20 = scalar_lea.sflag [#allocation4], %s1543_s17 }
  0xb8   : > { %v530_v8 = vunpack.c.l.b16 %v524_v7 }
  0xba   : > { %v1564_v9 = vpack.c.b16 %v530_v8, %v530_v8 }
  0xbb   : > { %v512_v6 = vpop.f32.mrf.mxu0 }
  0xbe   : > { %518 = vrot.lane.b32.xlu0 %v511_v5, %s1392_s15  ;;  %s1732_s15 = sld [smem:[#allocation14_spill]] }
  0xc6   : > { %532 = vrot.lane.b32.xlu0 %v1564_v9, %s1393_s25 }
 0x128   : > { %v516_v10 = vpop.permute.xlu0 %515  ;;  %v522_v16 = vpop.permute.xlu1 %521 }
 0x129   : > { %v525_v11 = vpack.c.bf16 %v516_v10, %v516_v10  ;;  %v527_v18 = vpack.c.bf16 %v522_v16, %v522_v16 }
 0x12b   : > { %v555_v12 = vunpack.c.l.b16 %v525_v11  ;;  %v603_v21 = vunpack.c.l.b16 %v527_v18 }
 0x12d   : > { %v1567_v13 = vpack.c.b16 %v555_v12, %v555_v12  ;;  %v1574_v23 = vpack.c.b16 %v603_v21, %v603_v21 }
 0x12f   : > { %557 = vrot.lane.b32.xlu1 %v1567_v13, %s1393_s25 }
 0x130   : > { %v519_v14 = vpop.permute.xlu0 %518 }
 0x131   : > { %v526_v15 = vpack.c.bf16 %v519_v14, %v519_v14 }
 0x133   : > { %v579_v17 = vunpack.c.l.b16 %v526_v15 }
 0x135   : > { %v1570_v19 = vpack.c.b16 %v579_v17, %v579_v17 }
 0x137   : > { %581 = vrot.lane.b32.xlu2 %v1570_v19, %s1393_s25 }
 0x138   : > { %v533_v20 = vpop.permute.xlu0 %532 }
 0x139   : > { %v539_v22 = vsel %vm534_vm1, %v533_v20, 0 }
 0x13a   : > { %548 = vmatpush.bf16.xpose.msra.mxu1 %v539_v22 }
 0x13f   : > { %605 = vrot.lane.b32.xlu2 %v1574_v23, %s1393_s25 }
 0x141   : > { %1118 = vmatmul.msk.bf16.vlgmr.msra.gmra.mxu1 %vm534_vm1, %v524_v7 }
 0x191   : > { %v582_v24 = vpop.permute.xlu2 %581 }
 0x192   : > { %v587_v25 = vsel %vm534_vm1, %v582_v24, 0 }
 0x193   : > { %596 = vmatpush.bf16.xpose.msra.mxu3 %v587_v25 }
 0x199   : > { %v606_v26 = vpop.permute.xlu2 %605 }
 0x19a   : > { %1120 = vmatmul.msk.bf16.vlgmr.msra.gmra.mxu3 %vm534_vm1, %v526_v15  ;;  %v611_v27 = vsel %vm534_vm1, %v606_v26, 0 }
 0x19b   : > { %620 = vmatpush.bf16.xpose.msrb.mxu0 %v611_v27 }
 0x1a1   : > { %v558_v28 = vpop.permute.xlu1 %557 }
 0x1a2   : > { %1121 = vmatmul.msk.bf16.vlgmr.msrb.gmra.mxu0 %vm534_vm1, %v527_v18  ;;  %v563_v29 = vsel %vm534_vm1, %v558_v28, 0 }
 0x1a3   : > { %572 = vmatpush.bf16.xpose.msra.mxu2 %v563_v29 }
 0x1aa   : > { %1119 = vmatmul.msk.bf16.vlgmr.msra.gmra.mxu2 %vm534_vm1, %v525_v11 }
 0x1be   : > { %v550_v30 = vpop.f32.mrf.mxu1 }
 0x1bf   : > { %v626_v37 = vsel %vm534_vm1, %v550_v30, -inf }
 0x1c6   : > { %v552_v31 = vpop.f32.mrf.mxu1 }
 0x21d   : > { %v598_v32 = vpop.f32.mrf.mxu3 }
 0x21e   : > { %v632_v33 = vsel %vm534_vm1, %v598_v32, -inf }
 0x21f   : > { %633 = vmax.xlane.f32.xlu2 %v632_v33  ;;  %v622_v34 = vpop.f32.mrf.mxu0 }
 0x220   : > { %v635_v35 = vsel %vm534_vm1, %v622_v34, -inf }
 0x221   : > { %636 = vmax.xlane.f32.xlu0 %v635_v35 }
 0x225   : > { %v600_v36 = vpop.f32.mrf.mxu3 }
 0x227   : > { %v624_v38 = vpop.f32.mrf.mxu0  ;;  %627 = vmax.xlane.f32.xlu2 %v626_v37 }
 0x22d   : > { %v574_v39 = vpop.f32.mrf.mxu2 }
 0x22e   : > { %v629_v40 = vsel %vm534_vm1, %v574_v39, -inf }
 0x22f   : > { %630 = vmax.xlane.f32.xlu1 %v629_v40 }
 0x235   : > { %v576_v41 = vpop.f32.mrf.mxu2 }
 0x292   : > { %v634_v42 = vpop.xlane.xlu2 %633 }
 0x293   : > { %v640_v43 = vsub.f32 %v598_v32, %v634_v42 }
 0x294   : > { %v637_v44 = vpop.xlane.xlu0 %636 }
 0x295   : > { %v644_v45 = vpack.c.bf16 %v640_v43, %v640_v43  ;;  %v641_v46 = vsub.f32 %v622_v34, %v637_v44 }
 0x297   : > { %v648_v47 = vunpack.c.l.bf16 %v644_v45  ;;  %v645_v48 = vpack.c.bf16 %v641_v46, %v641_v46 }
 0x299   : > { %v654_v49 = vmul.f32 1.442695, %v648_v47  ;;  %v649_v50 = vunpack.c.l.bf16 %v645_v48 }
 0x29a   : > { %v628_v6 = vpop.xlane.xlu2 %627 }
 0x29b   : > { %1254 = vpow2.f32 %v654_v49  ;;  %v656_v51 = vmul.f32 1.442695, %v649_v50  ;;  %v638_v7 = vsub.f32 %v550_v30, %v628_v6 }
 0x29d   : > { %1256 = vpow2.f32 %v656_v51  ;;  %v642_v8 = vpack.c.bf16 %v638_v7, %v638_v7 }
 0x29f   : > { %v646_v10 = vunpack.c.l.bf16 %v642_v8  ;;  %v1398_v8 = vmov 32.0  }
 0x2a1   : > { %v1255_v52 = vpop.eup %1254  ;;  %v650_v11 = vmul.f32 1.442695, %v646_v10 }
 0x2a2   : > { %v631_v53 = vpop.xlane.xlu1 %630  ;;  %v660_v54 = vpack.c.bf16 %v1255_v52, %v1255_v52 }
 0x2a3   : > { %v1257_v55 = vpop.eup %1256  ;;  %v639_v56 = vsub.f32 %v574_v39, %v631_v53 }
 0x2a4   : > { %v664_v57 = vunpack.c.l.bf16 %v660_v54  ;;  %v661_v58 = vpack.c.bf16 %v1257_v55, %v1257_v55  ;;  %v1168_v55 = vld [vmem:[%s1700_s3 + $0x8] sm:$0xff] }
 0x2a5   : > { %v643_v59 = vpack.c.bf16 %v639_v56, %v639_v56  ;;  %v1167_v56 = vld [vmem:[%s1700_s3] sm:$0xff] }
 0x2a6   : > { %v672_v60 = vsel %vm534_vm1, %v664_v57, 0.0  ;;  %v665_v61 = vunpack.c.l.bf16 %v661_v58 }
 0x2a7   : > { %v647_v62 = vunpack.c.l.bf16 %v643_v59  ;;  %673 = vadd.xlane.f32.xlu2 %v672_v60 }
 0x2a8   : > { %v675_v63 = vsel %vm534_vm1, %v665_v61, 0.0 }
 0x2a9   : > { %v652_v0 = vmul.f32 1.442695, %v647_v62  ;;  %676 = vadd.xlane.f32.xlu0 %v675_v63 }
 0x2ab   : > { %1258 = vpow2.f32 %v652_v0  ;;  %v1247_v0 = vld [vmem:[%s1701_s4] ss:$0 sm:$0xff] }
 0x2ac   : > { %1260 = vpow2.f32 %v650_v11 }
 0x2b1   : > { %v1259_v1 = vpop.eup %1258 }
 0x2b2   : > { %v659_v3 = vpack.c.bf16 %v1259_v1, %v1259_v1  ;;  %v1261_v12 = vpop.eup %1260  ;;  %v528_v1 = vunpack.c.l.bf16 %v1557_v2 }
 0x2b3   : > { %v658_v14 = vpack.c.bf16 %v1261_v12, %v1261_v12 }
 0x2b4   : > { %v663_v4 = vunpack.c.l.bf16 %v659_v3 }
 0x2b5   : > { %v662_v15 = vunpack.c.l.bf16 %v658_v14 }
 0x2b6   : > { %v669_v5 = vsel %vm534_vm1, %v663_v4, 0.0 }
 0x2b7   : > { %670 = vadd.xlane.f32.xlu1 %v669_v5  ;;  %v666_v16 = vsel %vm534_vm1, %v662_v15, 0.0 }
 0x2bd   : > { %762 = vrot.lane.b32.xlu0 %v1574_v23, %s1394_s16 }
 0x2bf   : > { %741 = vrot.lane.b32.xlu2 %v1570_v19, %s1394_s16 }
 0x2c5   : > { %698 = vrot.lane.b32.xlu0 %v1564_v9, %s1394_s16 }
 0x2d0   : > { %720 = vrot.lane.b32.xlu1 %v1567_v13, %s1394_s16 }
 0x2fa   : > { %667 = vadd.xlane.f32.xlu1 %v666_v16 }
 0x31a   : > { %v674_v17 = vpop.xlane.xlu2 %673 }
 0x31b   : > { %1262 = vrcp.f32 %v674_v17 }
 0x31c   : > { %v677_v18 = vpop.xlane.xlu0 %676 }
 0x31d   : > { %1264 = vrcp.f32 %v677_v18 }
 0x321   : > { %v1263_v9 = vpop.eup %1262 }
 0x322   : > { %v684_v19 = vpack.c.bf16 %v1263_v9, %v1263_v9  ;;  %v742_v13 = vpop.permute.xlu2 %741 }
 0x323   : > { %v1265_v20 = vpop.eup %1264  ;;  %v747_v21 = vsel %vm703_vm2, %v742_v13, 0  ;;  %v1170_v13 = vld [vmem:[%s1704_s7 + $0x8] sm:$0xff] }
 0x324   : > { %v688_v22 = vunpack.c.l.bf16 %v684_v19  ;;  %756 = vmatpush.bf16.msrb.mxu3 %v747_v21  ;;  %v685_v24 = vpack.c.bf16 %v1265_v20, %v1265_v20  ;;  %v1169_v20 = vld [vmem:[%s1704_s7] sm:$0xff]  ;;  %v1174_v21 = vld [vmem:[%s1706_s9 + $0x18] sm:$0xff] }
 0x326   : > { %v692_v23 = vmul.f32 %v688_v22, %v664_v57  ;;  %v689_v26 = vunpack.c.l.bf16 %v685_v24  ;;  %v1173_v24 = vld [vmem:[%s1706_s9 + $0x10] sm:$0xff] }
 0x328   : > { %v696_v25 = vpack.c.bf16 %v692_v23, %v692_v23  ;;  %v693_v28 = vmul.f32 %v689_v26, %v665_v61  ;;  %960 = vmatpush.bf16.msra.mxu3 %v1174_v21 }
 0x32a   : > { %1124 = vmatmul.msk.bf16.vlgmr.msrb.gmra.mxu3 %vm534_vm1, %v696_v25  ;;  %v671_v27 = vpop.xlane.xlu1 %670  ;;  %v697_v31 = vpack.c.bf16 %v693_v28, %v693_v28 }
 0x32b   : > { %1266 = vrcp.f32 %v671_v27 }
 0x32c   : > { %961 = vmatpush.bf16.msra.mxu3 %v1173_v24 }
 0x32f   : > { %v763_v29 = vpop.permute.xlu0 %762 }
 0x330   : > { %v768_v30 = vsel %vm703_vm2, %v763_v29, 0 }
 0x331   : > { %777 = vmatpush.bf16.msra.mxu0 %v768_v30  ;;  %v1267_v32 = vpop.eup %1266 }
 0x332   : > { %v683_v35 = vpack.c.bf16 %v1267_v32, %v1267_v32  ;;  %v1248_v32 = vld [vmem:[%s1702_s5] ss:$0 sm:$0xff] }
 0x334   : > { %1125 = vmatmul.msk.bf16.vlgmr.msra.gmra.mxu0 %vm534_vm1, %v697_v31  ;;  %v687_v36 = vunpack.c.l.bf16 %v683_v35 }
 0x336   : > { %v691_v37 = vmul.f32 %v687_v36, %v663_v4 }
 0x337   : > { %v699_v33 = vpop.permute.xlu0 %698 }
 0x338   : > { %v705_v34 = vsel %vm703_vm2, %v699_v33, 0  ;;  %v695_v40 = vpack.c.bf16 %v691_v37, %v691_v37 }
 0x339   : > { %714 = vmatpush.bf16.msrb.mxu1 %v705_v34  ;;  %v1249_v34 = vld [vmem:[%s1703_s6] ss:$0 sm:$0xff] }
 0x33d   : > { %830 = vmatpush.bf16.msra.mxu1 %v1168_v55 }
 0x341   : > { %831 = vmatpush.bf16.msra.mxu1 %v1167_v56 }
 0x342   : > { %v721_v38 = vpop.permute.xlu1 %720 }
 0x343   : > { %v726_v39 = vsel %vm703_vm2, %v721_v38, 0 }
 0x344   : > { %735 = vmatpush.bf16.msrb.mxu2 %v726_v39  ;;  %v1172_v39 = vld [vmem:[%s1706_s9 + $0x8] sm:$0xff] }
 0x345   : > { %962 = vmatpush.bf16.msra.mxu3 %v1172_v39 }
 0x347   : > { %1123 = vmatmul.msk.bf16.vlgmr.msrb.gmra.mxu2 %vm534_vm1, %v695_v40  ;;  %v1171_v40 = vld [vmem:[%s1706_s9] sm:$0xff] }
 0x348   : > { %907 = vmatpush.bf16.msra.mxu2 %v1170_v13 }
 0x349   : > { %963 = vmatpush.bf16.msra.mxu3 %v1171_v40 }
 0x34c   : > { %908 = vmatpush.bf16.msra.mxu2 %v1169_v20 }
 0x36d   : > { %v668_v41 = vpop.xlane.xlu1 %667 }
 0x36e   : > { %1268 = vrcp.f32 %v668_v41  ;;  %v1250_v41 = vld [vmem:[%s1705_s8] ss:$0 sm:$0xff] }
 0x36f   : > { %1270 = vrcp.f32 %v1398_v8 }
 0x374   : > { %v1269_v42 = vpop.eup %1268 }
 0x375   : > { %v682_v43 = vpack.c.bf16 %v1269_v42, %v1269_v42  ;;  %v1271_v10 = vpop.eup %1270 }
 0x376   : > { %v844_v11 = vmul.f32 32.0, %v1271_v10  ;;  %vm848_vm5 = vweird.f32 %v1271_v10 }
 0x377   : > { %v686_v44 = vunpack.c.l.bf16 %v682_v43 }
 0x378   : > { %v845_v12 = vsub.f32 1.0, %v844_v11 }
 0x379   : > { %v690_v45 = vmul.f32 %v686_v44, %v662_v15 }
 0x37a   : > { %v846_v14 = vmul.f32 %v1271_v10, %v845_v12 }
 0x37b   : > { %v694_v46 = vpack.c.bf16 %v690_v45, %v690_v45 }
 0x37c   : > { %v847_v15 = vadd.f32 %v1271_v10, %v846_v14 }
 0x37d   : > { %1122 = vmatmul.msk.bf16.vlgmr.msrb.gmra.mxu1 %vm534_vm1, %v694_v46 }
 0x37e   : > { %v849_v16 = vsel %vm848_vm5, %v1271_v10, %v847_v15 }
 0x3ad   : > { %v758_v47 = vpop.f32.mrf.mxu3 }
 0x3ae   : > { %788 = vrot.lane.b32.xlu0 %v758_v47, %s1395_s13  ;;  %v1251_v47 = vld [vmem:[%s1707_s10] ss:$0 sm:$0xff]  ;;  %s1733_s13 = sld [smem:[#allocation16_spill]] }
 0x3b1   : > { %v779_v48 = vpop.f32.mrf.mxu0 }
 0x3b5   : > { %v760_v49 = vpop.f32.mrf.mxu3 }
 0x3b9   : > { %v781_v50 = vpop.f32.mrf.mxu0 }
 0x3ca   : > { %v737_v51 = vpop.f32.mrf.mxu2 }
 0x3cb   : > { %784 = vrot.lane.b32.xlu2 %v737_v51, %s1396_s12  ;;  %s1015_s12 = scalar_lea.hbm %s1733_s13, %s1162_s14 }
 0x3cc   : > { %s1019_s2 = sshll.u32 %s1015_s12, 4  ;;  %s1020_s2 = int_to_ptr.hbm [resolvable:$true] %s1019_s2 }
 0x3cd   : > { %s1320_s19 = sshra.s32 %s1020_s2, 4  ;;  %s1321_s19 = int_to_ptr.hbm [resolvable:$true] %s1320_s19 }
 0x3ce   : > { %s1322_s14 = scalar_lea.hbm %s1321_s19, 8  ;;  %p1327_p7 = scmp.lt.s32.totalorder %s1321_s19, %s1733_s13 }
 0x3cf   : > { %p1323_p4 = scmp.ne.s32.totalorder %s1321_s19, %s1322_s14 }
 0x3d1   : > { %p1324_p5 = pnand %p1323_p4, %p1520_p9 }
 0x3d2   : > { %v739_v52 = vpop.f32.mrf.mxu2 }
 0x3d3   : > { %792 = vrot.lane.b32.xlu2 %v779_v48, %s1397_s18  ;;  %p1325_p6 = pneg %p1324_p5 }
 0x3fa   : > { %v716_v53 = vpop.f32.mrf.mxu1 }
 0x402   : > { %v718_v54 = vpop.f32.mrf.mxu1 }
 0x420   : > { %v789_v59 = vpop.permute.xlu0 %788 }
 0x425   : > { %v785_v57 = vpop.permute.xlu2 %784 }
 0x426   : > { %v795_v58 = vsel %vm534_vm1, %v716_v53, %v785_v57 }
 0x427   : > { %v797_v61 = vsel %vm796_vm3, %v795_v58, %v789_v59 }
 0x42d   : > { %v793_v60 = vpop.permute.xlu2 %792 }
 0x42e   : > { %v799_v62 = vsel %vm798_vm4, %v797_v61, %v793_v60 }
 0x42f   : > { %v800_v63 = vpack.c.bf16 %v799_v62, %v799_v62 }
 0x431   : > { %1134 = vmatmul.msk.bf16.vlgmr.msra.gmra.mxu1 %vm497_vm0, %v800_v63 }
 0x4ae   : > { %v833_v3 = vpop.f32.mrf.mxu1 }
 0x4af   : > { %v834_v4 = vadd.f32 %v1247_v0, %v833_v3 }
 0x4b1   : > { %v837_v5 = vadd.f32 %v834_v4, %v528_v1  ;;  %v1252_v4 = vld [vmem:[%s1732_s15] ss:$0 sm:$0xff] }
 0x4b3   : > { %v840_v6 = vsel %vm497_vm0, %v837_v5, 0.0 }
 0x4b4   : > { %841 = vadd.xlane.f32.xlu0 %v840_v6 }
 0x4b6   : > { %v835_v7 = vpop.f32.mrf.mxu1 }
 0x4b7   : > { %v1253_v7 = vld [vmem:[%s1735_s0] ss:$0 sm:$0xff]  ;;  %s1326_s0 = scalar_lea.hbm %s1733_s13, 16 }
 0x4b8   : > { %p1328_p8 = scmp.lt.s32.totalorder %s1326_s0, %s1322_s14 }
 0x4ba   : > { %p1329_p10 = por %p1328_p8, %p1327_p7 }
 0x4bc   : > { %p1330_p13 = pnand %p1329_p10, %p1325_p6 }
 0x527   : > { %v842_v17 = vpop.xlane.xlu0 %841 }
 0x528   : > { %v850_v18 = vmul.f32 %v849_v16, %v842_v17 }
 0x52a   : > { %v851_v9 = vsub.f32 %v837_v5, %v850_v18 }
 0x52c   : > { %v852_v2 = vmul.f32 %v851_v9, %v851_v9 }
 0x52e   : > { %v853_v19 = vsel %vm497_vm0, %v852_v2, 0.0 }
 0x52f   : > { %854 = vadd.xlane.f32.xlu2 %v853_v19 }
 0x5a2   : > { %v855_v22 = vpop.xlane.xlu2 %854 }
 0x5a3   : > { %v856_v23 = vmul.f32 %v855_v22, %v849_v16 }
 0x5a5   : > { %v857_v25 = vadd.f32 1e-05, %v856_v23 }
 0x5a7   : > { %1272 = vrsqrt.f32 %v857_v25  ;;  %vm864_vm7 = vweird.f32 %v857_v25 }
 0x5ad   : > { %v1273_v26 = vpop.eup %1272 }
 0x5ae   : > { %v859_v27 = vmul.f32 %v1273_v26, %v857_v25  ;;  %vm865_vm6 = vweird.f32 %v1273_v26 }
 0x5af   : > { %vm866_vm8 = vmor %vm864_vm7, %vm865_vm6 }
 0x5b0   : > { %v860_v28 = vmul.f32 %v1273_v26, %v859_v27 }
 0x5b2   : > { %v861_v29 = vmul.f32 0.5, %v860_v28 }
 0x5b4   : > { %v862_v30 = vsub.f32 1.5, %v861_v29 }
 0x5b6   : > { %v863_v31 = vmul.f32 %v1273_v26, %v862_v30 }
 0x5b8   : > { %v867_v33 = vsel %vm866_vm8, %v1273_v26, %v863_v31 }
 0x5b9   : > { %v868_v35 = vmul.f32 %v867_v33, %v851_v9 }
 0x5bb   : > { %v872_v36 = vmul.f32 %v1248_v32, %v868_v35 }
 0x5bd   : > { %v876_v37 = vadd.f32 %v1249_v34, %v872_v36 }
 0x5bf   : > { %v877_v38 = vpack.c.bf16 %v876_v37, %v876_v37 }
 0x5c1   : > { %1143 = vmatmul.msk.bf16.vlgmr.msra.gmra.mxu2 %vm497_vm0, %v877_v38 }
 0x644   : > { %v910_v42 = vpop.f32.mrf.mxu2 }
 0x645   : > { %v911_v43 = vadd.f32 %v1250_v41, %v910_v42 }
 0x647   : > { %v914_v44 = vmax.f32 %v911_v43, 0.0 }
 0x649   : > { %v915_v45 = vpack.c.bf16 %v914_v44, %v914_v44 }
 0x64b   : > { %1160 = vmatmul.msk.bf16.vlgmr.msra.gmra.mxu3 %vm952_vm9, %v915_v45 }
 0x64c   : > { %v912_v46 = vpop.f32.mrf.mxu2 }
 0x6ce   : > { %v965_v48 = vpop.f32.mrf.mxu3 }
 0x6cf   : > { %v966_v49 = vadd.f32 %v1251_v47, %v965_v48 }
 0x6d1   : > { %v969_v50 = vadd.f32 %v966_v49, %v876_v37 }
 0x6d3   : > { %v972_v51 = vsel %vm497_vm0, %v969_v50, 0.0 }
 0x6d4   : > { %973 = vadd.xlane.f32.xlu1 %v972_v51 }
 0x6d6   : > { %v967_v52 = vpop.f32.mrf.mxu3 }
 0x747   : > { %v974_v53 = vpop.xlane.xlu1 %973 }
 0x748   : > { %v975_v54 = vmul.f32 %v974_v53, %v849_v16 }
 0x74a   : > { %v976_v55 = vsub.f32 %v969_v50, %v975_v54 }
 0x74c   : > { %v977_v56 = vmul.f32 %v976_v55, %v976_v55 }
 0x74e   : > { %v978_v57 = vsel %vm497_vm0, %v977_v56, 0.0 }
 0x74f   : > { %979 = vadd.xlane.f32.xlu1 %v978_v57 }
 0x7c2   : > { %v980_v58 = vpop.xlane.xlu1 %979 }
 0x7c3   : > { %v981_v59 = vmul.f32 %v980_v58, %v849_v16 }
 0x7c5   : > { %v982_v60 = vadd.f32 1e-05, %v981_v59 }
 0x7c7   : > { %1274 = vrsqrt.f32 %v982_v60  ;;  %vm989_vm11 = vweird.f32 %v982_v60 }
 0x7cd   : > { %v1275_v61 = vpop.eup %1274 }
 0x7ce   : > { %v984_v62 = vmul.f32 %v1275_v61, %v982_v60  ;;  %vm990_vm10 = vweird.f32 %v1275_v61 }
 0x7cf   : > { %vm991_vm12 = vmor %vm989_vm11, %vm990_vm10 }
 0x7d0   : > { %v985_v63 = vmul.f32 %v1275_v61, %v984_v62 }
 0x7d2   : > { %v986_v0 = vmul.f32 0.5, %v985_v63 }
 0x7d4   : > { %v987_v1 = vsub.f32 1.5, %v986_v0 }
 0x7d6   : > { %v988_v3 = vmul.f32 %v1275_v61, %v987_v1 }
 0x7d8   : > { %v992_v5 = vsel %vm991_vm12, %v1275_v61, %v988_v3 }
 0x7d9   : > { %v993_v6 = vmul.f32 %v992_v5, %v976_v55 }
 0x7db   : > { %v997_v8 = vmul.f32 %v1252_v4, %v993_v6 }
 0x7dd   : > { %v1001_v10 = vadd.f32 %v1253_v7, %v997_v8 }
 0x7df   : > { %1002 = vst.msk [vmem:[%s474_s28] sm:$0xff] %vm497_vm0, %v1001_v10 }
 0x7e0   : > { %1333 = shalt.err (!%p1330_p13)
}
 0x7e1   : > { %1177 = dma.vmem_to_hbm [thread:$0]  (%p1520_p9), %s1018_s1, 128, %s1020_s2, %s1004_s20  }
 0x7e2 PF: > { %s1736_s17 = sld [smem:[#allocation8_spill]]  ;;  %p1184_p0 = pnand %p1103_p12, %p1527_p11 }
 0x7e4   : > { %p1185_p1 = pneg %p1184_p0 }
 0x7e8   : > { %s1031_s12 = sand.u32 1, %s1736_s17  }
 0x7e9   : > { %s1032_s11 = scalar_lea.sflag [#allocation4], %s1031_s12 }
 0x7ea   : > { %1363 = dma.done.wait (%p1185_p1), %s1032_s11, 128  }
 0x7eb   : > { %1365 = vsyncadd (%p1185_p1), %s1032_s11, 4294967168  ;;  %s29_s30 = sadd.s32 1, %s1388_s30   ;;  %s1737_s1 = sld [smem:[#allocation9_spill]] }
 0x7ec   : > { %p26_p2 = scmp.ge.s32.totalorder %s29_s30, 4   ;;  %s1738_s25 = smov %s1372_s26 }
 0x7ed   : > { %s1739_s26 = smov %s1376_s27  ;;  %s1740_s27 = smov %s1525_s22 }
 0x7ee   : > { %s1741_s28 = smov %s1384_s29  ;;  %28 = sbr.rel (!%p26_p2) target bundleno = 13 (0xd), region = 117 }
 0x7f1   : > { %s1742_s29 = smov %s1737_s1 }
 0x7f3   :  { %1038 = vsyncpa [#allocation3], 1 }
 0x7f4   :  { %1040 = vsyncpa [#allocation3 + $0x1], 1 }
 0x7f5   :  { %1041 = vsyncpa [#allocation4], 1 }
 0x7f6   :  { %1043 = vsyncpa [#allocation4 + $0x1], 1 }

</bundles_post_ra>
